<compile_context>
chip_gen: v6e
topology: v6e:2x2x1
jax: 0.10.0
libtpu: 0.0.40
codegen_flags: <defaults>
</compile_context>

<pallas_src>
import jax
import jax.numpy as jnp
from jax.experimental import pallas as pl
from jax.experimental.pallas import tpu as pltpu

LANE = 128
SUBLANE = 8


def _round_up(x, m):
    return ((x + m - 1) // m) * m


# -----------------------------------------------------------------------------
# Fused Pallas kernel: raster @ resampled centers + masked squared-error loss
# -----------------------------------------------------------------------------
def _make_fused_kernel(n_faces, H, W, render_size, orig_size):
    scale = float(render_size) / float(orig_size)
    max_src = float(render_size - 1)

    def kernel(coef_ref, gt_ref, si_ref, loss_ref):
        Hs, Ws = si_ref.shape

        # Separable resampled pixel-center coordinates:
        #   px: (1, Ws) lane vector, py: (Hs, 1) sublane vector.
        col_i = jax.lax.broadcasted_iota(jnp.int32, (1, Ws), 1)
        row_i = jax.lax.broadcasted_iota(jnp.int32, (Hs, 1), 0)
        px = jnp.minimum(jnp.floor(col_i.astype(jnp.float32) * scale),
                         max_src) + 0.5                      # (1, Ws)
        py = jnp.minimum(jnp.floor(row_i.astype(jnp.float32) * scale),
                         max_src) + 0.5                      # (Hs, 1)

        # Running max over faces of min(e0, e1, e2); coverage = running >= 0.
        running = jnp.full((Hs, Ws), jnp.float32(-3.0e38), jnp.float32)

        for f in range(n_faces):  # static unroll (small face count)
            b = 9 * f
            a0 = coef_ref[b + 0]; b0 = coef_ref[b + 1]; c0 = coef_ref[b + 2]
            a1 = coef_ref[b + 3]; b1 = coef_ref[b + 4]; c1 = coef_ref[b + 5]
            a2 = coef_ref[b + 6]; b2 = coef_ref[b + 7]; c2 = coef_ref[b + 8]
            # Tiny-vector terms, then ONE full-tile broadcast add per edge.
            e0 = (a0 * px + c0) + (b0 * py)
            e1 = (a1 * px + c1) + (b1 * py)
            e2 = (a2 * px + c2) + (b2 * py)
            face_min = jnp.minimum(e0, jnp.minimum(e1, e2))
            running = jnp.maximum(running, face_min)

        cov = (running >= 0.0).astype(jnp.float32)
        si_ref[...] = cov

        # Valid-region mask: (1, Wp) column mask; row mask only if H is padded.
        mask = (col_i < W).astype(jnp.float32)               # (1, Ws)
        if Hs > H:
            mask = mask * (row_i < H).astype(jnp.float32)    # (Hs, Ws)

        d = (cov - gt_ref[...]) * mask
        # Lane reduction first (XLU), then final reduction; scalar to SMEM.
        loss_ref[0, 0] = jnp.sum(jnp.sum(d * d, axis=-1, keepdims=True))

    return kernel


def fused_render_and_loss(coef, mask_gt_padded, H, W, render_size, orig_size,
                          n_faces):
    """coef: (F*9,) f32 edge coefficients; mask_gt_padded: (H_pad, W_pad) f32."""
    Hp, Wp = mask_gt_padded.shape
    kernel = _make_fused_kernel(n_faces, H, W, render_size, orig_size)
    cost = pl.CostEstimate(
        flops=int(n_faces * Hp * Wp * 6 + Hp * Wp * 8),
        transcendentals=0,
        bytes_accessed=int(2 * Hp * Wp * 4 + n_faces * 9 * 4 + 4),
    )
    si_pad, loss = pl.pallas_call(
        kernel,
        out_shape=(jax.ShapeDtypeStruct((Hp, Wp), jnp.float32),
                   jax.ShapeDtypeStruct((1, 1), jnp.float32)),
        in_specs=[pl.BlockSpec(memory_space=pltpu.MemorySpace.SMEM),
                  pl.BlockSpec(memory_space=pltpu.MemorySpace.VMEM)],
        out_specs=(pl.BlockSpec(memory_space=pltpu.MemorySpace.VMEM),
                   pl.BlockSpec(memory_space=pltpu.MemorySpace.SMEM)),
        cost_estimate=cost,
    )(coef, mask_gt_padded)
    return loss[0, 0], si_pad[:H, :W]


# -----------------------------------------------------------------------------
# Plain-JAX glue: se(3) exponential map and edge-coefficient precompute
# -----------------------------------------------------------------------------
def _hat(w):
    wx, wy, wz = w[0], w[1], w[2]
    z = jnp.zeros((), jnp.float32)
    return jnp.array([[z, -wz, wy],
                      [wz, z, -wx],
                      [-wy, wx, z]], dtype=jnp.float32)


def se3_exp_map(dof):
    """dof = [u(3) translation-log, w(3) rotation-log] -> (R, t).

    Taylor fallbacks for small rotation angles avoid catastrophic cancellation.
    """
    u = dof[:3]
    w = dof[3:]
    theta2 = jnp.sum(w * w)
    theta = jnp.sqrt(theta2)
    small = theta < 1e-4
    theta_safe = jnp.where(small, 1.0, theta)

    A = jnp.where(small, 1.0 - theta2 / 6.0, jnp.sin(theta_safe) / theta_safe)
    B = jnp.where(small, 0.5 - theta2 / 24.0,
                  (1.0 - jnp.cos(theta_safe)) / (theta_safe ** 2))
    C = jnp.where(small, 1.0 / 6.0 - theta2 / 120.0,
                  (theta_safe - jnp.sin(theta_safe)) / (theta_safe ** 3))

    W = _hat(w)
    W2 = W @ W
    I3 = jnp.eye(3, dtype=jnp.float32)
    R = I3 + A * W + B * W2
    V = I3 + B * W + C * W2
    t = V @ u
    return R, t


def project_edge_coefficients(vertices, faces, R, t, K, orig_size, render_size):
    """Project mesh and build per-face edge-line coefficients in render coords.

    Returns a flat (F*9,) float32 array laid out as
    [a0, b0, c0, a1, b1, c1, a2, b2, c2] per face, pre-oriented to positive
    winding (one-sided inside test) with degenerate / behind-camera faces
    masked to "never inside" (a=b=0, c=-1).
    """
    cam = vertices @ R.T + t[None, :]                 # (V, 3)
    z = cam[:, 2]
    x = cam[:, 0] / z
    y = cam[:, 1] / z
    s = render_size / orig_size
    u = (K[0, 0] * x + K[0, 2]) * s                   # render-grid pixel coords
    v = (K[1, 1] * y + K[1, 2]) * s

    i0, i1, i2 = faces[:, 0], faces[:, 1], faces[:, 2]
    x0, y0 = u[i0], v[i0]
    x1, y1 = u[i1], v[i1]
    x2, y2 = u[i2], v[i2]

    def edge(xa, ya, xb, yb):
        # e(px, py) = (xb-xa)*(py-ya) - (yb-ya)*(px-xa) = a*px + b*py + c
        a = -(yb - ya)
        b = (xb - xa)
        c = (yb - ya) * xa - (xb - xa) * ya
        return a, b, c

    a0, b0, c0 = edge(x0, y0, x1, y1)
    a1, b1, c1 = edge(x1, y1, x2, y2)
    a2, b2, c2 = edge(x2, y2, x0, y0)

    area = (x1 - x0) * (y2 - y0) - (y1 - y0) * (x2 - x0)   # 2x signed area
    sgn = jnp.where(area < 0.0, -1.0, 1.0)                 # flip winding to CCW

    z_ok = (z[i0] > 1e-6) & (z[i1] > 1e-6) & (z[i2] > 1e-6)
    valid = z_ok & (jnp.abs(area) > 1e-8)

    def fix(a, b, c):
        a = jnp.where(valid, a * sgn, 0.0)
        b = jnp.where(valid, b * sgn, 0.0)
        c = jnp.where(valid, c * sgn, -1.0)
        return a, b, c

    a0, b0, c0 = fix(a0, b0, c0)
    a1, b1, c1 = fix(a1, b1, c1)
    a2, b2, c2 = fix(a2, b2, c2)

    coef = jnp.stack([a0, b0, c0, a1, b1, c1, a2, b2, c2], axis=1)  # (F, 9)
    return coef.reshape(-1).astype(jnp.float32)


# -----------------------------------------------------------------------------
# Model: mirrors the PyTorch Module's forward()
# -----------------------------------------------------------------------------
class Model:
    def __init__(self, vertices, faces, K, init_dof, mask_gt, render_size):
        self.vertices = vertices.astype(jnp.float32)   # (V, 3)
        self.faces = faces.astype(jnp.int32)           # (F, 3)
        self.K = K.astype(jnp.float32)                 # (3, 3)
        self.dof = init_dof.astype(jnp.float32)        # (6,) learnable parameter
        self.mask_gt = mask_gt.astype(jnp.float32)     # (H, W)
        self.H, self.W = mask_gt.shape
        self.orig_size = max(self.H, self.W)
        self.render_size = render_size
        self.n_faces = int(self.faces.shape[0])

        # Lane-dense padded ground truth, built once.
        self.Hp = _round_up(self.H, SUBLANE)
        self.Wp = _round_up(max(self.W, LANE), LANE)
        self.mask_gt_padded = (
            jnp.zeros((self.Hp, self.Wp), jnp.float32)
            .at[:self.H, :self.W].set(self.mask_gt)
        )

        # Single jitted forward of dof: fuses the scalar glue with the kernel.
        verts, fcs, Kc, gt_pad = (self.vertices, self.faces, self.K,
                                  self.mask_gt_padded)
        H, W = self.H, self.W
        rs, osz, nf = self.render_size, self.orig_size, self.n_faces

        def _fwd(dof):
            R, t = se3_exp_map(dof)
            coef = project_edge_coefficients(verts, fcs, R, t, Kc, osz, rs)
            return fused_render_and_loss(coef, gt_pad, H, W, rs, osz, nf)

        self._forward_jit = jax.jit(_fwd)

    def forward(self):
        return self._forward_jit(self.dof)


# -----------------------------------------------------------------------------
# Main
# -----------------------------------------------------------------------------
if __name__ == "__main__":
    key = jax.random.PRNGKey(0)

    # Small deterministic cube mesh (8 vertices, 12 triangular faces).
    corners = jnp.array(
        [[-1, -1, -1], [1, -1, -1], [1, 1, -1], [-1, 1, -1],
         [-1, -1, 1], [1, -1, 1], [1, 1, 1], [-1, 1, 1]], dtype=jnp.float32)
    vertices = 0.3 * corners
    faces = jnp.array(
        [[0, 1, 2], [0, 2, 3],
         [4, 6, 5], [4, 7, 6],
         [0, 4, 5], [0, 5, 1],
         [1, 5, 6], [1, 6, 2],
         [2, 6, 7], [2, 7, 3],
         [3, 7, 4], [3, 4, 0]], dtype=jnp.int32)

    H, W = 56, 48                 # mask_gt shape -> orig_size = 56
    render_size = 64
    K = jnp.array([[64.0, 0.0, W / 2.0],
                   [0.0, 64.0, H / 2.0],
                   [0.0, 0.0, 1.0]], dtype=jnp.float32)

    # Deterministic init dof: small rotation, object ~2.5 units in front of camera.
    init_dof = jnp.array([0.05, -0.03, 2.5, 0.02, -0.01, 0.03], dtype=jnp.float32)

    # Deterministic ground-truth mask from PRNGKey(0).
    mask_gt = (jax.random.uniform(key, (H, W)) > 0.7).astype(jnp.float32)

    model = Model(vertices, faces, K, init_dof, mask_gt, render_size)
    loss, si = model.forward()
    jax.block_until_ready((loss, si))

    assert si.shape == (H, W) and si.dtype == jnp.float32
    assert loss.shape == () and loss.dtype == jnp.float32
    assert bool(jnp.isfinite(loss))
    print("KERNEL_OK")
</pallas_src>

<mosaic_0001>
module attributes {stable_mosaic.version = 11 : i64} {
  func.func @kernel(%arg0: memref<108xf32, #tpu.memory_space<smem>>, %arg1: memref<56x128xf32, #tpu.memory_space<vmem>>, %arg2: memref<56x128xf32, #tpu.memory_space<vmem>>, %arg3: memref<1x1xf32, #tpu.memory_space<smem>>) attributes {dimension_semantics = [], scalar_prefetch = 0 : i64, scratch_operands = 0 : i64, tpu.core_type = #tpu.core_type<tc>} {
    %0 = tpu.iota {dimensions = array<i32: 1>} : vector<1x128xi32>
    %1 = tpu.iota {dimensions = array<i32: 0>} : vector<56x1xi32>
    %2 = arith.sitofp %0 : vector<1x128xi32> to vector<1x128xf32>
    %cst = arith.constant 1.14285719 : f32
    %3 = vector.broadcast %cst : f32 to vector<1x128xf32>
    %4 = arith.mulf %2, %3 : vector<1x128xf32>
    %5 = math.floor %4 : vector<1x128xf32>
    %cst_0 = arith.constant 6.300000e+01 : f32
    %6 = vector.broadcast %cst_0 : f32 to vector<1x128xf32>
    %7 = arith.minimumf %5, %6 : vector<1x128xf32>
    %cst_1 = arith.constant 5.000000e-01 : f32
    %8 = vector.broadcast %cst_1 : f32 to vector<1x128xf32>
    %9 = arith.addf %7, %8 : vector<1x128xf32>
    %10 = arith.sitofp %1 : vector<56x1xi32> to vector<56x1xf32>
    %cst_2 = arith.constant 1.14285719 : f32
    %11 = vector.broadcast %cst_2 : f32 to vector<56x1xf32>
    %12 = arith.mulf %10, %11 : vector<56x1xf32>
    %13 = math.floor %12 : vector<56x1xf32>
    %cst_3 = arith.constant 6.300000e+01 : f32
    %14 = vector.broadcast %cst_3 : f32 to vector<56x1xf32>
    %15 = arith.minimumf %13, %14 : vector<56x1xf32>
    %cst_4 = arith.constant 5.000000e-01 : f32
    %16 = vector.broadcast %cst_4 : f32 to vector<56x1xf32>
    %17 = arith.addf %15, %16 : vector<56x1xf32>
    %cst_5 = arith.constant -3.000000e+38 : f32
    %18 = vector.broadcast %cst_5 : f32 to vector<56x128xf32>
    %c0 = arith.constant 0 : index
    %19 = memref.load %arg0[%c0] : memref<108xf32, #tpu.memory_space<smem>>
    %c1 = arith.constant 1 : index
    %20 = memref.load %arg0[%c1] : memref<108xf32, #tpu.memory_space<smem>>
    %c2 = arith.constant 2 : index
    %21 = memref.load %arg0[%c2] : memref<108xf32, #tpu.memory_space<smem>>
    %c3 = arith.constant 3 : index
    %22 = memref.load %arg0[%c3] : memref<108xf32, #tpu.memory_space<smem>>
    %c4 = arith.constant 4 : index
    %23 = memref.load %arg0[%c4] : memref<108xf32, #tpu.memory_space<smem>>
    %c5 = arith.constant 5 : index
    %24 = memref.load %arg0[%c5] : memref<108xf32, #tpu.memory_space<smem>>
    %c6 = arith.constant 6 : index
    %25 = memref.load %arg0[%c6] : memref<108xf32, #tpu.memory_space<smem>>
    %c7 = arith.constant 7 : index
    %26 = memref.load %arg0[%c7] : memref<108xf32, #tpu.memory_space<smem>>
    %c8 = arith.constant 8 : index
    %27 = memref.load %arg0[%c8] : memref<108xf32, #tpu.memory_space<smem>>
    %28 = vector.broadcast %19 : f32 to vector<1x128xf32>
    %29 = arith.mulf %28, %9 : vector<1x128xf32>
    %30 = vector.broadcast %21 : f32 to vector<1x128xf32>
    %31 = arith.addf %29, %30 : vector<1x128xf32>
    %32 = vector.broadcast %20 : f32 to vector<56x1xf32>
    %33 = arith.mulf %32, %17 : vector<56x1xf32>
    %34 = vector.broadcast %31 : vector<1x128xf32> to vector<56x128xf32>
    %35 = vector.broadcast %33 : vector<56x1xf32> to vector<56x128xf32>
    %36 = arith.addf %34, %35 : vector<56x128xf32>
    %37 = vector.broadcast %22 : f32 to vector<1x128xf32>
    %38 = arith.mulf %37, %9 : vector<1x128xf32>
    %39 = vector.broadcast %24 : f32 to vector<1x128xf32>
    %40 = arith.addf %38, %39 : vector<1x128xf32>
    %41 = vector.broadcast %23 : f32 to vector<56x1xf32>
    %42 = arith.mulf %41, %17 : vector<56x1xf32>
    %43 = vector.broadcast %40 : vector<1x128xf32> to vector<56x128xf32>
    %44 = vector.broadcast %42 : vector<56x1xf32> to vector<56x128xf32>
    %45 = arith.addf %43, %44 : vector<56x128xf32>
    %46 = vector.broadcast %25 : f32 to vector<1x128xf32>
    %47 = arith.mulf %46, %9 : vector<1x128xf32>
    %48 = vector.broadcast %27 : f32 to vector<1x128xf32>
    %49 = arith.addf %47, %48 : vector<1x128xf32>
    %50 = vector.broadcast %26 : f32 to vector<56x1xf32>
    %51 = arith.mulf %50, %17 : vector<56x1xf32>
    %52 = vector.broadcast %49 : vector<1x128xf32> to vector<56x128xf32>
    %53 = vector.broadcast %51 : vector<56x1xf32> to vector<56x128xf32>
    %54 = arith.addf %52, %53 : vector<56x128xf32>
    %55 = arith.minimumf %45, %54 : vector<56x128xf32>
    %56 = arith.minimumf %36, %55 : vector<56x128xf32>
    %57 = arith.maximumf %18, %56 : vector<56x128xf32>
    %c9 = arith.constant 9 : index
    %58 = memref.load %arg0[%c9] : memref<108xf32, #tpu.memory_space<smem>>
    %c10 = arith.constant 10 : index
    %59 = memref.load %arg0[%c10] : memref<108xf32, #tpu.memory_space<smem>>
    %c11 = arith.constant 11 : index
    %60 = memref.load %arg0[%c11] : memref<108xf32, #tpu.memory_space<smem>>
    %c12 = arith.constant 12 : index
    %61 = memref.load %arg0[%c12] : memref<108xf32, #tpu.memory_space<smem>>
    %c13 = arith.constant 13 : index
    %62 = memref.load %arg0[%c13] : memref<108xf32, #tpu.memory_space<smem>>
    %c14 = arith.constant 14 : index
    %63 = memref.load %arg0[%c14] : memref<108xf32, #tpu.memory_space<smem>>
    %c15 = arith.constant 15 : index
    %64 = memref.load %arg0[%c15] : memref<108xf32, #tpu.memory_space<smem>>
    %c16 = arith.constant 16 : index
    %65 = memref.load %arg0[%c16] : memref<108xf32, #tpu.memory_space<smem>>
    %c17 = arith.constant 17 : index
    %66 = memref.load %arg0[%c17] : memref<108xf32, #tpu.memory_space<smem>>
    %67 = vector.broadcast %58 : f32 to vector<1x128xf32>
    %68 = arith.mulf %67, %9 : vector<1x128xf32>
    %69 = vector.broadcast %60 : f32 to vector<1x128xf32>
    %70 = arith.addf %68, %69 : vector<1x128xf32>
    %71 = vector.broadcast %59 : f32 to vector<56x1xf32>
    %72 = arith.mulf %71, %17 : vector<56x1xf32>
    %73 = vector.broadcast %70 : vector<1x128xf32> to vector<56x128xf32>
    %74 = vector.broadcast %72 : vector<56x1xf32> to vector<56x128xf32>
    %75 = arith.addf %73, %74 : vector<56x128xf32>
    %76 = vector.broadcast %61 : f32 to vector<1x128xf32>
    %77 = arith.mulf %76, %9 : vector<1x128xf32>
    %78 = vector.broadcast %63 : f32 to vector<1x128xf32>
    %79 = arith.addf %77, %78 : vector<1x128xf32>
    %80 = vector.broadcast %62 : f32 to vector<56x1xf32>
    %81 = arith.mulf %80, %17 : vector<56x1xf32>
    %82 = vector.broadcast %79 : vector<1x128xf32> to vector<56x128xf32>
    %83 = vector.broadcast %81 : vector<56x1xf32> to vector<56x128xf32>
    %84 = arith.addf %82, %83 : vector<56x128xf32>
    %85 = vector.broadcast %64 : f32 to vector<1x128xf32>
    %86 = arith.mulf %85, %9 : vector<1x128xf32>
    %87 = vector.broadcast %66 : f32 to vector<1x128xf32>
    %88 = arith.addf %86, %87 : vector<1x128xf32>
    %89 = vector.broadcast %65 : f32 to vector<56x1xf32>
    %90 = arith.mulf %89, %17 : vector<56x1xf32>
    %91 = vector.broadcast %88 : vector<1x128xf32> to vector<56x128xf32>
    %92 = vector.broadcast %90 : vector<56x1xf32> to vector<56x128xf32>
    %93 = arith.addf %91, %92 : vector<56x128xf32>
    %94 = arith.minimumf %84, %93 : vector<56x128xf32>
    %95 = arith.minimumf %75, %94 : vector<56x128xf32>
    %96 = arith.maximumf %57, %95 : vector<56x128xf32>
    %c18 = arith.constant 18 : index
    %97 = memref.load %arg0[%c18] : memref<108xf32, #tpu.memory_space<smem>>
    %c19 = arith.constant 19 : index
    %98 = memref.load %arg0[%c19] : memref<108xf32, #tpu.memory_space<smem>>
    %c20 = arith.constant 20 : index
    %99 = memref.load %arg0[%c20] : memref<108xf32, #tpu.memory_space<smem>>
    %c21 = arith.constant 21 : index
    %100 = memref.load %arg0[%c21] : memref<108xf32, #tpu.memory_space<smem>>
    %c22 = arith.constant 22 : index
    %101 = memref.load %arg0[%c22] : memref<108xf32, #tpu.memory_space<smem>>
    %c23 = arith.constant 23 : index
    %102 = memref.load %arg0[%c23] : memref<108xf32, #tpu.memory_space<smem>>
    %c24 = arith.constant 24 : index
    %103 = memref.load %arg0[%c24] : memref<108xf32, #tpu.memory_space<smem>>
    %c25 = arith.constant 25 : index
    %104 = memref.load %arg0[%c25] : memref<108xf32, #tpu.memory_space<smem>>
    %c26 = arith.constant 26 : index
    %105 = memref.load %arg0[%c26] : memref<108xf32, #tpu.memory_space<smem>>
    %106 = vector.broadcast %97 : f32 to vector<1x128xf32>
    %107 = arith.mulf %106, %9 : vector<1x128xf32>
    %108 = vector.broadcast %99 : f32 to vector<1x128xf32>
    %109 = arith.addf %107, %108 : vector<1x128xf32>
    %110 = vector.broadcast %98 : f32 to vector<56x1xf32>
    %111 = arith.mulf %110, %17 : vector<56x1xf32>
    %112 = vector.broadcast %109 : vector<1x128xf32> to vector<56x128xf32>
    %113 = vector.broadcast %111 : vector<56x1xf32> to vector<56x128xf32>
    %114 = arith.addf %112, %113 : vector<56x128xf32>
    %115 = vector.broadcast %100 : f32 to vector<1x128xf32>
    %116 = arith.mulf %115, %9 : vector<1x128xf32>
    %117 = vector.broadcast %102 : f32 to vector<1x128xf32>
    %118 = arith.addf %116, %117 : vector<1x128xf32>
    %119 = vector.broadcast %101 : f32 to vector<56x1xf32>
    %120 = arith.mulf %119, %17 : vector<56x1xf32>
    %121 = vector.broadcast %118 : vector<1x128xf32> to vector<56x128xf32>
    %122 = vector.broadcast %120 : vector<56x1xf32> to vector<56x128xf32>
    %123 = arith.addf %121, %122 : vector<56x128xf32>
    %124 = vector.broadcast %103 : f32 to vector<1x128xf32>
    %125 = arith.mulf %124, %9 : vector<1x128xf32>
    %126 = vector.broadcast %105 : f32 to vector<1x128xf32>
    %127 = arith.addf %125, %126 : vector<1x128xf32>
    %128 = vector.broadcast %104 : f32 to vector<56x1xf32>
    %129 = arith.mulf %128, %17 : vector<56x1xf32>
    %130 = vector.broadcast %127 : vector<1x128xf32> to vector<56x128xf32>
    %131 = vector.broadcast %129 : vector<56x1xf32> to vector<56x128xf32>
    %132 = arith.addf %130, %131 : vector<56x128xf32>
    %133 = arith.minimumf %123, %132 : vector<56x128xf32>
    %134 = arith.minimumf %114, %133 : vector<56x128xf32>
    %135 = arith.maximumf %96, %134 : vector<56x128xf32>
    %c27 = arith.constant 27 : index
    %136 = memref.load %arg0[%c27] : memref<108xf32, #tpu.memory_space<smem>>
    %c28 = arith.constant 28 : index
    %137 = memref.load %arg0[%c28] : memref<108xf32, #tpu.memory_space<smem>>
    %c29 = arith.constant 29 : index
    %138 = memref.load %arg0[%c29] : memref<108xf32, #tpu.memory_space<smem>>
    %c30 = arith.constant 30 : index
    %139 = memref.load %arg0[%c30] : memref<108xf32, #tpu.memory_space<smem>>
    %c31 = arith.constant 31 : index
    %140 = memref.load %arg0[%c31] : memref<108xf32, #tpu.memory_space<smem>>
    %c32 = arith.constant 32 : index
    %141 = memref.load %arg0[%c32] : memref<108xf32, #tpu.memory_space<smem>>
    %c33 = arith.constant 33 : index
    %142 = memref.load %arg0[%c33] : memref<108xf32, #tpu.memory_space<smem>>
    %c34 = arith.constant 34 : index
    %143 = memref.load %arg0[%c34] : memref<108xf32, #tpu.memory_space<smem>>
    %c35 = arith.constant 35 : index
    %144 = memref.load %arg0[%c35] : memref<108xf32, #tpu.memory_space<smem>>
    %145 = vector.broadcast %136 : f32 to vector<1x128xf32>
    %146 = arith.mulf %145, %9 : vector<1x128xf32>
    %147 = vector.broadcast %138 : f32 to vector<1x128xf32>
    %148 = arith.addf %146, %147 : vector<1x128xf32>
    %149 = vector.broadcast %137 : f32 to vector<56x1xf32>
    %150 = arith.mulf %149, %17 : vector<56x1xf32>
    %151 = vector.broadcast %148 : vector<1x128xf32> to vector<56x128xf32>
    %152 = vector.broadcast %150 : vector<56x1xf32> to vector<56x128xf32>
    %153 = arith.addf %151, %152 : vector<56x128xf32>
    %154 = vector.broadcast %139 : f32 to vector<1x128xf32>
    %155 = arith.mulf %154, %9 : vector<1x128xf32>
    %156 = vector.broadcast %141 : f32 to vector<1x128xf32>
    %157 = arith.addf %155, %156 : vector<1x128xf32>
    %158 = vector.broadcast %140 : f32 to vector<56x1xf32>
    %159 = arith.mulf %158, %17 : vector<56x1xf32>
    %160 = vector.broadcast %157 : vector<1x128xf32> to vector<56x128xf32>
    %161 = vector.broadcast %159 : vector<56x1xf32> to vector<56x128xf32>
    %162 = arith.addf %160, %161 : vector<56x128xf32>
    %163 = vector.broadcast %142 : f32 to vector<1x128xf32>
    %164 = arith.mulf %163, %9 : vector<1x128xf32>
    %165 = vector.broadcast %144 : f32 to vector<1x128xf32>
    %166 = arith.addf %164, %165 : vector<1x128xf32>
    %167 = vector.broadcast %143 : f32 to vector<56x1xf32>
    %168 = arith.mulf %167, %17 : vector<56x1xf32>
    %169 = vector.broadcast %166 : vector<1x128xf32> to vector<56x128xf32>
    %170 = vector.broadcast %168 : vector<56x1xf32> to vector<56x128xf32>
    %171 = arith.addf %169, %170 : vector<56x128xf32>
    %172 = arith.minimumf %162, %171 : vector<56x128xf32>
    %173 = arith.minimumf %153, %172 : vector<56x128xf32>
    %174 = arith.maximumf %135, %173 : vector<56x128xf32>
    %c36 = arith.constant 36 : index
    %175 = memref.load %arg0[%c36] : memref<108xf32, #tpu.memory_space<smem>>
    %c37 = arith.constant 37 : index
    %176 = memref.load %arg0[%c37] : memref<108xf32, #tpu.memory_space<smem>>
    %c38 = arith.constant 38 : index
    %177 = memref.load %arg0[%c38] : memref<108xf32, #tpu.memory_space<smem>>
    %c39 = arith.constant 39 : index
    %178 = memref.load %arg0[%c39] : memref<108xf32, #tpu.memory_space<smem>>
    %c40 = arith.constant 40 : index
    %179 = memref.load %arg0[%c40] : memref<108xf32, #tpu.memory_space<smem>>
    %c41 = arith.constant 41 : index
    %180 = memref.load %arg0[%c41] : memref<108xf32, #tpu.memory_space<smem>>
    %c42 = arith.constant 42 : index
    %181 = memref.load %arg0[%c42] : memref<108xf32, #tpu.memory_space<smem>>
    %c43 = arith.constant 43 : index
    %182 = memref.load %arg0[%c43] : memref<108xf32, #tpu.memory_space<smem>>
    %c44 = arith.constant 44 : index
    %183 = memref.load %arg0[%c44] : memref<108xf32, #tpu.memory_space<smem>>
    %184 = vector.broadcast %175 : f32 to vector<1x128xf32>
    %185 = arith.mulf %184, %9 : vector<1x128xf32>
    %186 = vector.broadcast %177 : f32 to vector<1x128xf32>
    %187 = arith.addf %185, %186 : vector<1x128xf32>
    %188 = vector.broadcast %176 : f32 to vector<56x1xf32>
    %189 = arith.mulf %188, %17 : vector<56x1xf32>
    %190 = vector.broadcast %187 : vector<1x128xf32> to vector<56x128xf32>
    %191 = vector.broadcast %189 : vector<56x1xf32> to vector<56x128xf32>
    %192 = arith.addf %190, %191 : vector<56x128xf32>
    %193 = vector.broadcast %178 : f32 to vector<1x128xf32>
    %194 = arith.mulf %193, %9 : vector<1x128xf32>
    %195 = vector.broadcast %180 : f32 to vector<1x128xf32>
    %196 = arith.addf %194, %195 : vector<1x128xf32>
    %197 = vector.broadcast %179 : f32 to vector<56x1xf32>
    %198 = arith.mulf %197, %17 : vector<56x1xf32>
    %199 = vector.broadcast %196 : vector<1x128xf32> to vector<56x128xf32>
    %200 = vector.broadcast %198 : vector<56x1xf32> to vector<56x128xf32>
    %201 = arith.addf %199, %200 : vector<56x128xf32>
    %202 = vector.broadcast %181 : f32 to vector<1x128xf32>
    %203 = arith.mulf %202, %9 : vector<1x128xf32>
    %204 = vector.broadcast %183 : f32 to vector<1x128xf32>
    %205 = arith.addf %203, %204 : vector<1x128xf32>
    %206 = vector.broadcast %182 : f32 to vector<56x1xf32>
    %207 = arith.mulf %206, %17 : vector<56x1xf32>
    %208 = vector.broadcast %205 : vector<1x128xf32> to vector<56x128xf32>
    %209 = vector.broadcast %207 : vector<56x1xf32> to vector<56x128xf32>
    %210 = arith.addf %208, %209 : vector<56x128xf32>
    %211 = arith.minimumf %201, %210 : vector<56x128xf32>
    %212 = arith.minimumf %192, %211 : vector<56x128xf32>
    %213 = arith.maximumf %174, %212 : vector<56x128xf32>
    %c45 = arith.constant 45 : index
    %214 = memref.load %arg0[%c45] : memref<108xf32, #tpu.memory_space<smem>>
    %c46 = arith.constant 46 : index
    %215 = memref.load %arg0[%c46] : memref<108xf32, #tpu.memory_space<smem>>
    %c47 = arith.constant 47 : index
    %216 = memref.load %arg0[%c47] : memref<108xf32, #tpu.memory_space<smem>>
    %c48 = arith.constant 48 : index
    %217 = memref.load %arg0[%c48] : memref<108xf32, #tpu.memory_space<smem>>
    %c49 = arith.constant 49 : index
    %218 = memref.load %arg0[%c49] : memref<108xf32, #tpu.memory_space<smem>>
    %c50 = arith.constant 50 : index
    %219 = memref.load %arg0[%c50] : memref<108xf32, #tpu.memory_space<smem>>
    %c51 = arith.constant 51 : index
    %220 = memref.load %arg0[%c51] : memref<108xf32, #tpu.memory_space<smem>>
    %c52 = arith.constant 52 : index
    %221 = memref.load %arg0[%c52] : memref<108xf32, #tpu.memory_space<smem>>
    %c53 = arith.constant 53 : index
    %222 = memref.load %arg0[%c53] : memref<108xf32, #tpu.memory_space<smem>>
    %223 = vector.broadcast %214 : f32 to vector<1x128xf32>
    %224 = arith.mulf %223, %9 : vector<1x128xf32>
    %225 = vector.broadcast %216 : f32 to vector<1x128xf32>
    %226 = arith.addf %224, %225 : vector<1x128xf32>
    %227 = vector.broadcast %215 : f32 to vector<56x1xf32>
    %228 = arith.mulf %227, %17 : vector<56x1xf32>
    %229 = vector.broadcast %226 : vector<1x128xf32> to vector<56x128xf32>
    %230 = vector.broadcast %228 : vector<56x1xf32> to vector<56x128xf32>
    %231 = arith.addf %229, %230 : vector<56x128xf32>
    %232 = vector.broadcast %217 : f32 to vector<1x128xf32>
    %233 = arith.mulf %232, %9 : vector<1x128xf32>
    %234 = vector.broadcast %219 : f32 to vector<1x128xf32>
    %235 = arith.addf %233, %234 : vector<1x128xf32>
    %236 = vector.broadcast %218 : f32 to vector<56x1xf32>
    %237 = arith.mulf %236, %17 : vector<56x1xf32>
    %238 = vector.broadcast %235 : vector<1x128xf32> to vector<56x128xf32>
    %239 = vector.broadcast %237 : vector<56x1xf32> to vector<56x128xf32>
    %240 = arith.addf %238, %239 : vector<56x128xf32>
    %241 = vector.broadcast %220 : f32 to vector<1x128xf32>
    %242 = arith.mulf %241, %9 : vector<1x128xf32>
    %243 = vector.broadcast %222 : f32 to vector<1x128xf32>
    %244 = arith.addf %242, %243 : vector<1x128xf32>
    %245 = vector.broadcast %221 : f32 to vector<56x1xf32>
    %246 = arith.mulf %245, %17 : vector<56x1xf32>
    %247 = vector.broadcast %244 : vector<1x128xf32> to vector<56x128xf32>
    %248 = vector.broadcast %246 : vector<56x1xf32> to vector<56x128xf32>
    %249 = arith.addf %247, %248 : vector<56x128xf32>
    %250 = arith.minimumf %240, %249 : vector<56x128xf32>
    %251 = arith.minimumf %231, %250 : vector<56x128xf32>
    %252 = arith.maximumf %213, %251 : vector<56x128xf32>
    %c54 = arith.constant 54 : index
    %253 = memref.load %arg0[%c54] : memref<108xf32, #tpu.memory_space<smem>>
    %c55 = arith.constant 55 : index
    %254 = memref.load %arg0[%c55] : memref<108xf32, #tpu.memory_space<smem>>
    %c56 = arith.constant 56 : index
    %255 = memref.load %arg0[%c56] : memref<108xf32, #tpu.memory_space<smem>>
    %c57 = arith.constant 57 : index
    %256 = memref.load %arg0[%c57] : memref<108xf32, #tpu.memory_space<smem>>
    %c58 = arith.constant 58 : index
    %257 = memref.load %arg0[%c58] : memref<108xf32, #tpu.memory_space<smem>>
    %c59 = arith.constant 59 : index
    %258 = memref.load %arg0[%c59] : memref<108xf32, #tpu.memory_space<smem>>
    %c60 = arith.constant 60 : index
    %259 = memref.load %arg0[%c60] : memref<108xf32, #tpu.memory_space<smem>>
    %c61 = arith.constant 61 : index
    %260 = memref.load %arg0[%c61] : memref<108xf32, #tpu.memory_space<smem>>
    %c62 = arith.constant 62 : index
    %261 = memref.load %arg0[%c62] : memref<108xf32, #tpu.memory_space<smem>>
    %262 = vector.broadcast %253 : f32 to vector<1x128xf32>
    %263 = arith.mulf %262, %9 : vector<1x128xf32>
    %264 = vector.broadcast %255 : f32 to vector<1x128xf32>
    %265 = arith.addf %263, %264 : vector<1x128xf32>
    %266 = vector.broadcast %254 : f32 to vector<56x1xf32>
    %267 = arith.mulf %266, %17 : vector<56x1xf32>
    %268 = vector.broadcast %265 : vector<1x128xf32> to vector<56x128xf32>
    %269 = vector.broadcast %267 : vector<56x1xf32> to vector<56x128xf32>
    %270 = arith.addf %268, %269 : vector<56x128xf32>
    %271 = vector.broadcast %256 : f32 to vector<1x128xf32>
    %272 = arith.mulf %271, %9 : vector<1x128xf32>
    %273 = vector.broadcast %258 : f32 to vector<1x128xf32>
    %274 = arith.addf %272, %273 : vector<1x128xf32>
    %275 = vector.broadcast %257 : f32 to vector<56x1xf32>
    %276 = arith.mulf %275, %17 : vector<56x1xf32>
    %277 = vector.broadcast %274 : vector<1x128xf32> to vector<56x128xf32>
    %278 = vector.broadcast %276 : vector<56x1xf32> to vector<56x128xf32>
    %279 = arith.addf %277, %278 : vector<56x128xf32>
    %280 = vector.broadcast %259 : f32 to vector<1x128xf32>
    %281 = arith.mulf %280, %9 : vector<1x128xf32>
    %282 = vector.broadcast %261 : f32 to vector<1x128xf32>
    %283 = arith.addf %281, %282 : vector<1x128xf32>
    %284 = vector.broadcast %260 : f32 to vector<56x1xf32>
    %285 = arith.mulf %284, %17 : vector<56x1xf32>
    %286 = vector.broadcast %283 : vector<1x128xf32> to vector<56x128xf32>
    %287 = vector.broadcast %285 : vector<56x1xf32> to vector<56x128xf32>
    %288 = arith.addf %286, %287 : vector<56x128xf32>
    %289 = arith.minimumf %279, %288 : vector<56x128xf32>
    %290 = arith.minimumf %270, %289 : vector<56x128xf32>
    %291 = arith.maximumf %252, %290 : vector<56x128xf32>
    %c63 = arith.constant 63 : index
    %292 = memref.load %arg0[%c63] : memref<108xf32, #tpu.memory_space<smem>>
    %c64 = arith.constant 64 : index
    %293 = memref.load %arg0[%c64] : memref<108xf32, #tpu.memory_space<smem>>
    %c65 = arith.constant 65 : index
    %294 = memref.load %arg0[%c65] : memref<108xf32, #tpu.memory_space<smem>>
    %c66 = arith.constant 66 : index
    %295 = memref.load %arg0[%c66] : memref<108xf32, #tpu.memory_space<smem>>
    %c67 = arith.constant 67 : index
    %296 = memref.load %arg0[%c67] : memref<108xf32, #tpu.memory_space<smem>>
    %c68 = arith.constant 68 : index
    %297 = memref.load %arg0[%c68] : memref<108xf32, #tpu.memory_space<smem>>
    %c69 = arith.constant 69 : index
    %298 = memref.load %arg0[%c69] : memref<108xf32, #tpu.memory_space<smem>>
    %c70 = arith.constant 70 : index
    %299 = memref.load %arg0[%c70] : memref<108xf32, #tpu.memory_space<smem>>
    %c71 = arith.constant 71 : index
    %300 = memref.load %arg0[%c71] : memref<108xf32, #tpu.memory_space<smem>>
    %301 = vector.broadcast %292 : f32 to vector<1x128xf32>
    %302 = arith.mulf %301, %9 : vector<1x128xf32>
    %303 = vector.broadcast %294 : f32 to vector<1x128xf32>
    %304 = arith.addf %302, %303 : vector<1x128xf32>
    %305 = vector.broadcast %293 : f32 to vector<56x1xf32>
    %306 = arith.mulf %305, %17 : vector<56x1xf32>
    %307 = vector.broadcast %304 : vector<1x128xf32> to vector<56x128xf32>
    %308 = vector.broadcast %306 : vector<56x1xf32> to vector<56x128xf32>
    %309 = arith.addf %307, %308 : vector<56x128xf32>
    %310 = vector.broadcast %295 : f32 to vector<1x128xf32>
    %311 = arith.mulf %310, %9 : vector<1x128xf32>
    %312 = vector.broadcast %297 : f32 to vector<1x128xf32>
    %313 = arith.addf %311, %312 : vector<1x128xf32>
    %314 = vector.broadcast %296 : f32 to vector<56x1xf32>
    %315 = arith.mulf %314, %17 : vector<56x1xf32>
    %316 = vector.broadcast %313 : vector<1x128xf32> to vector<56x128xf32>
    %317 = vector.broadcast %315 : vector<56x1xf32> to vector<56x128xf32>
    %318 = arith.addf %316, %317 : vector<56x128xf32>
    %319 = vector.broadcast %298 : f32 to vector<1x128xf32>
    %320 = arith.mulf %319, %9 : vector<1x128xf32>
    %321 = vector.broadcast %300 : f32 to vector<1x128xf32>
    %322 = arith.addf %320, %321 : vector<1x128xf32>
    %323 = vector.broadcast %299 : f32 to vector<56x1xf32>
    %324 = arith.mulf %323, %17 : vector<56x1xf32>
    %325 = vector.broadcast %322 : vector<1x128xf32> to vector<56x128xf32>
    %326 = vector.broadcast %324 : vector<56x1xf32> to vector<56x128xf32>
    %327 = arith.addf %325, %326 : vector<56x128xf32>
    %328 = arith.minimumf %318, %327 : vector<56x128xf32>
    %329 = arith.minimumf %309, %328 : vector<56x128xf32>
    %330 = arith.maximumf %291, %329 : vector<56x128xf32>
    %c72 = arith.constant 72 : index
    %331 = memref.load %arg0[%c72] : memref<108xf32, #tpu.memory_space<smem>>
    %c73 = arith.constant 73 : index
    %332 = memref.load %arg0[%c73] : memref<108xf32, #tpu.memory_space<smem>>
    %c74 = arith.constant 74 : index
    %333 = memref.load %arg0[%c74] : memref<108xf32, #tpu.memory_space<smem>>
    %c75 = arith.constant 75 : index
    %334 = memref.load %arg0[%c75] : memref<108xf32, #tpu.memory_space<smem>>
    %c76 = arith.constant 76 : index
    %335 = memref.load %arg0[%c76] : memref<108xf32, #tpu.memory_space<smem>>
    %c77 = arith.constant 77 : index
    %336 = memref.load %arg0[%c77] : memref<108xf32, #tpu.memory_space<smem>>
    %c78 = arith.constant 78 : index
    %337 = memref.load %arg0[%c78] : memref<108xf32, #tpu.memory_space<smem>>
    %c79 = arith.constant 79 : index
    %338 = memref.load %arg0[%c79] : memref<108xf32, #tpu.memory_space<smem>>
    %c80 = arith.constant 80 : index
    %339 = memref.load %arg0[%c80] : memref<108xf32, #tpu.memory_space<smem>>
    %340 = vector.broadcast %331 : f32 to vector<1x128xf32>
    %341 = arith.mulf %340, %9 : vector<1x128xf32>
    %342 = vector.broadcast %333 : f32 to vector<1x128xf32>
    %343 = arith.addf %341, %342 : vector<1x128xf32>
    %344 = vector.broadcast %332 : f32 to vector<56x1xf32>
    %345 = arith.mulf %344, %17 : vector<56x1xf32>
    %346 = vector.broadcast %343 : vector<1x128xf32> to vector<56x128xf32>
    %347 = vector.broadcast %345 : vector<56x1xf32> to vector<56x128xf32>
    %348 = arith.addf %346, %347 : vector<56x128xf32>
    %349 = vector.broadcast %334 : f32 to vector<1x128xf32>
    %350 = arith.mulf %349, %9 : vector<1x128xf32>
    %351 = vector.broadcast %336 : f32 to vector<1x128xf32>
    %352 = arith.addf %350, %351 : vector<1x128xf32>
    %353 = vector.broadcast %335 : f32 to vector<56x1xf32>
    %354 = arith.mulf %353, %17 : vector<56x1xf32>
    %355 = vector.broadcast %352 : vector<1x128xf32> to vector<56x128xf32>
    %356 = vector.broadcast %354 : vector<56x1xf32> to vector<56x128xf32>
    %357 = arith.addf %355, %356 : vector<56x128xf32>
    %358 = vector.broadcast %337 : f32 to vector<1x128xf32>
    %359 = arith.mulf %358, %9 : vector<1x128xf32>
    %360 = vector.broadcast %339 : f32 to vector<1x128xf32>
    %361 = arith.addf %359, %360 : vector<1x128xf32>
    %362 = vector.broadcast %338 : f32 to vector<56x1xf32>
    %363 = arith.mulf %362, %17 : vector<56x1xf32>
    %364 = vector.broadcast %361 : vector<1x128xf32> to vector<56x128xf32>
    %365 = vector.broadcast %363 : vector<56x1xf32> to vector<56x128xf32>
    %366 = arith.addf %364, %365 : vector<56x128xf32>
    %367 = arith.minimumf %357, %366 : vector<56x128xf32>
    %368 = arith.minimumf %348, %367 : vector<56x128xf32>
    %369 = arith.maximumf %330, %368 : vector<56x128xf32>
    %c81 = arith.constant 81 : index
    %370 = memref.load %arg0[%c81] : memref<108xf32, #tpu.memory_space<smem>>
    %c82 = arith.constant 82 : index
    %371 = memref.load %arg0[%c82] : memref<108xf32, #tpu.memory_space<smem>>
    %c83 = arith.constant 83 : index
    %372 = memref.load %arg0[%c83] : memref<108xf32, #tpu.memory_space<smem>>
    %c84 = arith.constant 84 : index
    %373 = memref.load %arg0[%c84] : memref<108xf32, #tpu.memory_space<smem>>
    %c85 = arith.constant 85 : index
    %374 = memref.load %arg0[%c85] : memref<108xf32, #tpu.memory_space<smem>>
    %c86 = arith.constant 86 : index
    %375 = memref.load %arg0[%c86] : memref<108xf32, #tpu.memory_space<smem>>
    %c87 = arith.constant 87 : index
    %376 = memref.load %arg0[%c87] : memref<108xf32, #tpu.memory_space<smem>>
    %c88 = arith.constant 88 : index
    %377 = memref.load %arg0[%c88] : memref<108xf32, #tpu.memory_space<smem>>
    %c89 = arith.constant 89 : index
    %378 = memref.load %arg0[%c89] : memref<108xf32, #tpu.memory_space<smem>>
    %379 = vector.broadcast %370 : f32 to vector<1x128xf32>
    %380 = arith.mulf %379, %9 : vector<1x128xf32>
    %381 = vector.broadcast %372 : f32 to vector<1x128xf32>
    %382 = arith.addf %380, %381 : vector<1x128xf32>
    %383 = vector.broadcast %371 : f32 to vector<56x1xf32>
    %384 = arith.mulf %383, %17 : vector<56x1xf32>
    %385 = vector.broadcast %382 : vector<1x128xf32> to vector<56x128xf32>
    %386 = vector.broadcast %384 : vector<56x1xf32> to vector<56x128xf32>
    %387 = arith.addf %385, %386 : vector<56x128xf32>
    %388 = vector.broadcast %373 : f32 to vector<1x128xf32>
    %389 = arith.mulf %388, %9 : vector<1x128xf32>
    %390 = vector.broadcast %375 : f32 to vector<1x128xf32>
    %391 = arith.addf %389, %390 : vector<1x128xf32>
    %392 = vector.broadcast %374 : f32 to vector<56x1xf32>
    %393 = arith.mulf %392, %17 : vector<56x1xf32>
    %394 = vector.broadcast %391 : vector<1x128xf32> to vector<56x128xf32>
    %395 = vector.broadcast %393 : vector<56x1xf32> to vector<56x128xf32>
    %396 = arith.addf %394, %395 : vector<56x128xf32>
    %397 = vector.broadcast %376 : f32 to vector<1x128xf32>
    %398 = arith.mulf %397, %9 : vector<1x128xf32>
    %399 = vector.broadcast %378 : f32 to vector<1x128xf32>
    %400 = arith.addf %398, %399 : vector<1x128xf32>
    %401 = vector.broadcast %377 : f32 to vector<56x1xf32>
    %402 = arith.mulf %401, %17 : vector<56x1xf32>
    %403 = vector.broadcast %400 : vector<1x128xf32> to vector<56x128xf32>
    %404 = vector.broadcast %402 : vector<56x1xf32> to vector<56x128xf32>
    %405 = arith.addf %403, %404 : vector<56x128xf32>
    %406 = arith.minimumf %396, %405 : vector<56x128xf32>
    %407 = arith.minimumf %387, %406 : vector<56x128xf32>
    %408 = arith.maximumf %369, %407 : vector<56x128xf32>
    %c90 = arith.constant 90 : index
    %409 = memref.load %arg0[%c90] : memref<108xf32, #tpu.memory_space<smem>>
    %c91 = arith.constant 91 : index
    %410 = memref.load %arg0[%c91] : memref<108xf32, #tpu.memory_space<smem>>
    %c92 = arith.constant 92 : index
    %411 = memref.load %arg0[%c92] : memref<108xf32, #tpu.memory_space<smem>>
    %c93 = arith.constant 93 : index
    %412 = memref.load %arg0[%c93] : memref<108xf32, #tpu.memory_space<smem>>
    %c94 = arith.constant 94 : index
    %413 = memref.load %arg0[%c94] : memref<108xf32, #tpu.memory_space<smem>>
    %c95 = arith.constant 95 : index
    %414 = memref.load %arg0[%c95] : memref<108xf32, #tpu.memory_space<smem>>
    %c96 = arith.constant 96 : index
    %415 = memref.load %arg0[%c96] : memref<108xf32, #tpu.memory_space<smem>>
    %c97 = arith.constant 97 : index
    %416 = memref.load %arg0[%c97] : memref<108xf32, #tpu.memory_space<smem>>
    %c98 = arith.constant 98 : index
    %417 = memref.load %arg0[%c98] : memref<108xf32, #tpu.memory_space<smem>>
    %418 = vector.broadcast %409 : f32 to vector<1x128xf32>
    %419 = arith.mulf %418, %9 : vector<1x128xf32>
    %420 = vector.broadcast %411 : f32 to vector<1x128xf32>
    %421 = arith.addf %419, %420 : vector<1x128xf32>
    %422 = vector.broadcast %410 : f32 to vector<56x1xf32>
    %423 = arith.mulf %422, %17 : vector<56x1xf32>
    %424 = vector.broadcast %421 : vector<1x128xf32> to vector<56x128xf32>
    %425 = vector.broadcast %423 : vector<56x1xf32> to vector<56x128xf32>
    %426 = arith.addf %424, %425 : vector<56x128xf32>
    %427 = vector.broadcast %412 : f32 to vector<1x128xf32>
    %428 = arith.mulf %427, %9 : vector<1x128xf32>
    %429 = vector.broadcast %414 : f32 to vector<1x128xf32>
    %430 = arith.addf %428, %429 : vector<1x128xf32>
    %431 = vector.broadcast %413 : f32 to vector<56x1xf32>
    %432 = arith.mulf %431, %17 : vector<56x1xf32>
    %433 = vector.broadcast %430 : vector<1x128xf32> to vector<56x128xf32>
    %434 = vector.broadcast %432 : vector<56x1xf32> to vector<56x128xf32>
    %435 = arith.addf %433, %434 : vector<56x128xf32>
    %436 = vector.broadcast %415 : f32 to vector<1x128xf32>
    %437 = arith.mulf %436, %9 : vector<1x128xf32>
    %438 = vector.broadcast %417 : f32 to vector<1x128xf32>
    %439 = arith.addf %437, %438 : vector<1x128xf32>
    %440 = vector.broadcast %416 : f32 to vector<56x1xf32>
    %441 = arith.mulf %440, %17 : vector<56x1xf32>
    %442 = vector.broadcast %439 : vector<1x128xf32> to vector<56x128xf32>
    %443 = vector.broadcast %441 : vector<56x1xf32> to vector<56x128xf32>
    %444 = arith.addf %442, %443 : vector<56x128xf32>
    %445 = arith.minimumf %435, %444 : vector<56x128xf32>
    %446 = arith.minimumf %426, %445 : vector<56x128xf32>
    %447 = arith.maximumf %408, %446 : vector<56x128xf32>
    %c99 = arith.constant 99 : index
    %448 = memref.load %arg0[%c99] : memref<108xf32, #tpu.memory_space<smem>>
    %c100 = arith.constant 100 : index
    %449 = memref.load %arg0[%c100] : memref<108xf32, #tpu.memory_space<smem>>
    %c101 = arith.constant 101 : index
    %450 = memref.load %arg0[%c101] : memref<108xf32, #tpu.memory_space<smem>>
    %c102 = arith.constant 102 : index
    %451 = memref.load %arg0[%c102] : memref<108xf32, #tpu.memory_space<smem>>
    %c103 = arith.constant 103 : index
    %452 = memref.load %arg0[%c103] : memref<108xf32, #tpu.memory_space<smem>>
    %c104 = arith.constant 104 : index
    %453 = memref.load %arg0[%c104] : memref<108xf32, #tpu.memory_space<smem>>
    %c105 = arith.constant 105 : index
    %454 = memref.load %arg0[%c105] : memref<108xf32, #tpu.memory_space<smem>>
    %c106 = arith.constant 106 : index
    %455 = memref.load %arg0[%c106] : memref<108xf32, #tpu.memory_space<smem>>
    %c107 = arith.constant 107 : index
    %456 = memref.load %arg0[%c107] : memref<108xf32, #tpu.memory_space<smem>>
    %457 = vector.broadcast %448 : f32 to vector<1x128xf32>
    %458 = arith.mulf %457, %9 : vector<1x128xf32>
    %459 = vector.broadcast %450 : f32 to vector<1x128xf32>
    %460 = arith.addf %458, %459 : vector<1x128xf32>
    %461 = vector.broadcast %449 : f32 to vector<56x1xf32>
    %462 = arith.mulf %461, %17 : vector<56x1xf32>
    %463 = vector.broadcast %460 : vector<1x128xf32> to vector<56x128xf32>
    %464 = vector.broadcast %462 : vector<56x1xf32> to vector<56x128xf32>
    %465 = arith.addf %463, %464 : vector<56x128xf32>
    %466 = vector.broadcast %451 : f32 to vector<1x128xf32>
    %467 = arith.mulf %466, %9 : vector<1x128xf32>
    %468 = vector.broadcast %453 : f32 to vector<1x128xf32>
    %469 = arith.addf %467, %468 : vector<1x128xf32>
    %470 = vector.broadcast %452 : f32 to vector<56x1xf32>
    %471 = arith.mulf %470, %17 : vector<56x1xf32>
    %472 = vector.broadcast %469 : vector<1x128xf32> to vector<56x128xf32>
    %473 = vector.broadcast %471 : vector<56x1xf32> to vector<56x128xf32>
    %474 = arith.addf %472, %473 : vector<56x128xf32>
    %475 = vector.broadcast %454 : f32 to vector<1x128xf32>
    %476 = arith.mulf %475, %9 : vector<1x128xf32>
    %477 = vector.broadcast %456 : f32 to vector<1x128xf32>
    %478 = arith.addf %476, %477 : vector<1x128xf32>
    %479 = vector.broadcast %455 : f32 to vector<56x1xf32>
    %480 = arith.mulf %479, %17 : vector<56x1xf32>
    %481 = vector.broadcast %478 : vector<1x128xf32> to vector<56x128xf32>
    %482 = vector.broadcast %480 : vector<56x1xf32> to vector<56x128xf32>
    %483 = arith.addf %481, %482 : vector<56x128xf32>
    %484 = arith.minimumf %474, %483 : vector<56x128xf32>
    %485 = arith.minimumf %465, %484 : vector<56x128xf32>
    %486 = arith.maximumf %447, %485 : vector<56x128xf32>
    %cst_6 = arith.constant 0.000000e+00 : f32
    %487 = vector.broadcast %cst_6 : f32 to vector<56x128xf32>
    %488 = arith.cmpf oge, %486, %487 : vector<56x128xf32>
    %489 = arith.extui %488 : vector<56x128xi1> to vector<56x128xi32>
    %490 = arith.sitofp %489 : vector<56x128xi32> to vector<56x128xf32>
    %c0_7 = arith.constant 0 : index
    %c0_8 = arith.constant 0 : index
    %491 = vector.load %arg2[%c0_7, %c0_8] : memref<56x128xf32, #tpu.memory_space<vmem>>, vector<56x128xf32>
    tpu.vector_store %arg2[%c0_7, %c0_8], %490 {strides = array<i32>} : memref<56x128xf32, #tpu.memory_space<vmem>>, vector<56x128xf32>,
    %c48_i32 = arith.constant 48 : i32
    %492 = vector.broadcast %c48_i32 : i32 to vector<1x128xi32>
    %493 = arith.cmpi slt, %0, %492 : vector<1x128xi32>
    %494 = arith.extui %493 : vector<1x128xi1> to vector<1x128xi32>
    %495 = arith.sitofp %494 : vector<1x128xi32> to vector<1x128xf32>
    %c0_9 = arith.constant 0 : index
    %c0_10 = arith.constant 0 : index
    %496 = vector.load %arg1[%c0_9, %c0_10] : memref<56x128xf32, #tpu.memory_space<vmem>>, vector<56x128xf32>
    %497 = arith.subf %490, %496 : vector<56x128xf32>
    %498 = vector.broadcast %495 : vector<1x128xf32> to vector<56x128xf32>
    %499 = arith.mulf %497, %498 : vector<56x128xf32>
    %500 = arith.mulf %499, %499 : vector<56x128xf32>
    %cst_11 = arith.constant dense<0.000000e+00> : vector<56xf32>
    %501 = vector.multi_reduction <add>, %500, %cst_11 [1] : vector<56x128xf32> to vector<56xf32>
    %502 = vector.shape_cast %501 : vector<56xf32> to vector<56x1xf32>
    %503 = vector.shape_cast %502 : vector<56x1xf32> to vector<1x56x1xf32>
    %cst_12 = arith.constant dense<0.000000e+00> : vector<1xf32>
    %504 = vector.multi_reduction <add>, %503, %cst_12 [1, 2] : vector<1x56x1xf32> to vector<1xf32>
    %505 = vector.shape_cast %504 : vector<1xf32> to vector<1x1x1xf32>
    %506 = vector.extract %505[0, 0, 0] : f32 from vector<1x1x1xf32>
    %c0_13 = arith.constant 0 : index
    %c0_14 = arith.constant 0 : index
    %507 = memref.load %arg3[%c0_13, %c0_14] : memref<1x1xf32, #tpu.memory_space<smem>>
    memref.store %506, %arg3[%c0_13, %c0_14] : memref<1x1xf32, #tpu.memory_space<smem>>
    return
  }
}

</mosaic_0001>

<bundles_post_ra>
// kernel: _fwd.1
= control target key start
LH: loop header
LB: loop body
LE: loop exit
PB: predicated region body
PF: predicated region fallthrough
CT: control target
= control target key end

     0   :  { %9 = vsyncpa [#allocation4], 0  ;;  %s2719_s0 = inlined_call_operand.vmem [shape: f32[108], index: 0, kind: input, shape index: {}]   ;;  %s2720_s1 = inlined_call_operand.vmem [shape: f32[56,128], index: 1, kind: input, shape index: {}]   ;;  %s2721_s2 = inlined_call_operand.vmem [shape: f32[56,128], index: 2, kind: output, shape index: {0}]   ;;  %s2722_s3 = inlined_call_operand.hbm [shape: f32[1,1], index: 3, kind: output, shape index: {1}]  }
   0x1   :  { %10 = vsyncpa [#allocation3], 0  ;;  %s17_s14 = sshll.u32 %s2719_s0, 4  ;;  %s18_s14 = int_to_ptr.vmem [resolvable:$true] %s17_s14 }
   0x2   :  { %s1357_s15 = scalar_lea.vmem %s18_s14, 16  ;;  %p1362_p1 = scmp.lt.s32.totalorder %s18_s14, %s18_s14 }
   0x3   :  { %p1358_p0 = scmp.ne.s32.totalorder %s18_s14, %s1357_s15  ;;  %p1363_p2 = scmp.lt.s32.totalorder %s1357_s15, %s1357_s15 }
   0x5   :  { %p1364_p3 = por %p1363_p2, %p1362_p1 }
   0x7   :  { %p1365_p4 = pnand %p1364_p3, %p1358_p0 }
   0x9   :  { %1368 = shalt.err (!%p1365_p4)
}
   0xa   :  { %s1381_s16 = smov [#allocation2]  }
   0xb   :  { %20 = dma.vmem_to_smem %s18_s14, 16, %s1381_s16, [#allocation4]  }
   0xc   :  { %1377 = dma.done.wait [#allocation4], 16  }
   0xd   :  { %1378 = vsyncadd [#allocation4], 4294967280 }
   0xe   :  { %26 = sfence }
   0xf   :  { %v27_v0 = vlaneseq  ;;  %s1407_s17 = sld [smem:[#allocation2]]  ;;  %vm1194_vm8 = vcmask 7168  }
  0x10   :  { %s1409_s18 = sld [smem:[#allocation2 + $0x1]] }
  0x11   :  { %v1411_v1 = vand.u32 127, %v27_v0  ;;  %v30_v2 = vshrl.u32 %v27_v0, 7  ;;  %s1413_s0 = sld [smem:[#allocation2 + $0x2]] }
  0x12   :  { %s1415_s19 = sld [smem:[#allocation2 + $0x3]] }
  0x13   :  { %v31_v3 = vadd.s32 8, %v30_v2  ;;  %v32_v4 = vadd.s32 16, %v30_v2  ;;  %v33_v5 = vadd.s32 24, %v30_v2  ;;  %v34_v6 = vadd.s32 32, %v30_v2  ;;  %s1417_s20 = sld [smem:[#allocation2 + $0x4]] }
  0x14   :  { %v35_v7 = vadd.s32 40, %v30_v2  ;;  %v36_v8 = vadd.s32 48, %v30_v2  ;;  %v37_v9 = vcvt.s32.f32 %v1411_v1  ;;  %v42_v10 = vcvt.s32.f32 %v30_v2  ;;  %s1420_s21 = sld [smem:[#allocation2 + $0x5]] }
  0x15   :  { %v43_v11 = vcvt.s32.f32 %v31_v3  ;;  %v44_v12 = vcvt.s32.f32 %v32_v4  ;;  %v45_v13 = vcvt.s32.f32 %v33_v5  ;;  %v46_v14 = vcvt.s32.f32 %v34_v6  ;;  %s1422_s22 = sld [smem:[#allocation2 + $0x6]] }
  0x16   :  { %v38_v15 = vmul.f32 1.1428572, %v37_v9  ;;  %v47_v16 = vcvt.s32.f32 %v35_v7  ;;  %v48_v17 = vcvt.s32.f32 %v36_v8  ;;  %v49_v18 = vmul.f32 1.1428572, %v42_v10  ;;  %s1424_s23 = sld [smem:[#allocation2 + $0x7]] }
  0x17   :  { %v50_v19 = vmul.f32 1.1428572, %v43_v11  ;;  %v51_v20 = vmul.f32 1.1428572, %v44_v12  ;;  %v52_v21 = vmul.f32 1.1428572, %v45_v13  ;;  %v86_v22 = vstv %s1407_s17 }
  0x18   :  { %v39_v23 = vfloor.f32 %v38_v15  ;;  %v53_v24 = vmul.f32 1.1428572, %v46_v14  ;;  %v54_v25 = vmul.f32 1.1428572, %v47_v16  ;;  %v55_v26 = vmul.f32 1.1428572, %v48_v17 }
  0x19   :  { %v56_v27 = vfloor.f32 %v49_v18  ;;  %v57_v28 = vfloor.f32 %v50_v19  ;;  %v58_v29 = vfloor.f32 %v51_v20  ;;  %v59_v30 = vfloor.f32 %v52_v21  ;;  %s1427_s24 = sld [smem:[#allocation2 + $0x8]] }
  0x1a   :  { %v40_v31 = vmin.f32 %v39_v23, 63.0  ;;  %v60_v32 = vfloor.f32 %v53_v24  ;;  %v61_v33 = vfloor.f32 %v54_v25  ;;  %v62_v34 = vfloor.f32 %v55_v26  ;;  %s1429_s25 = sld [smem:[#allocation2 + $0x9]] }
  0x1b   :  { %v63_v35 = vmin.f32 %v56_v27, 63.0  ;;  %v64_v36 = vmin.f32 %v57_v28, 63.0  ;;  %v65_v37 = vmin.f32 %v58_v29, 63.0  ;;  %v66_v38 = vmin.f32 %v59_v30, 63.0  ;;  %s1431_s26 = sld [smem:[#allocation2 + $0xa]] }
  0x1c   :  { %v1433_v39 = vadd.f32 0.5, %v40_v31  ;;  %v67_v40 = vmin.f32 %v60_v32, 63.0  ;;  %v68_v41 = vmin.f32 %v61_v33, 63.0  ;;  %s1435_s27 = sld [smem:[#allocation2 + $0xb]]  ;;  %v1437_v42 = vmin.f32 %v62_v34, 63.0 }
  0x1d   :  { %v1439_v43 = vadd.f32 0.5, %v63_v35  ;;  %v1441_v44 = vadd.f32 0.5, %v64_v36  ;;  %v1443_v45 = vadd.f32 0.5, %v65_v37  ;;  %s1445_s28 = sld [smem:[#allocation2 + $0xc]]  ;;  %v1447_v46 = vadd.f32 0.5, %v66_v38 }
  0x1e   :  { %2855 = vst [vmem:[#allocation8_spill] sm:$0xff] %v1437_v42  ;;  %v1449_v47 = vadd.f32 0.5, %v67_v40  ;;  %v1451_v48 = vadd.f32 0.5, %v68_v41  ;;  %v87_v49 = vmul.f32 %v86_v22, %v1433_v39  ;;  %s1454_s29 = sld [smem:[#allocation2 + $0xd]]  ;;  %v88_v50 = vstv %s1413_s0 }
  0x1f   :  { %2856 = vst [vmem:[#allocation9_spill] sm:$0xff] %v1447_v46  ;;  %v1458_v51 = vstv %s1409_s18  ;;  %v105_v52 = vstv %s1415_s19  ;;  %v107_v53 = vstv %s1420_s21  ;;  %s1462_s30 = sld [smem:[#allocation2 + $0xe]]  ;;  %v1470_v57 = vstv %s1417_s20 }
  0x20   :  { %2857 = vst [vmem:[#allocation10_spill] sm:$0xff] %v1449_v47  ;;  %2858 = vst [vmem:[#allocation11_spill] sm:$0xff] %v1451_v48  ;;  %v1464_v54 = vadd.f32 %v88_v50, %v87_v49  ;;  %v91_v55 = vmul.f32 %v1458_v51, %v1439_v43  ;;  %v106_v56 = vmul.f32 %v105_v52, %v1433_v39  ;;  %s1472_s4 = sld [smem:[#allocation2 + $0xf]]  ;;  %v124_v59 = vstv %s1422_s22 }
  0x21   :  { %2859 = vst [vmem:[#allocation12_spill] sm:$0xff] %v1458_v51  ;;  %2861 = vst [vmem:[#allocation14_spill] sm:$0xff] %v1470_v57  ;;  %v110_v58 = vmul.f32 %v1470_v57, %v1439_v43  ;;  %v126_v60 = vstv %s1427_s24  ;;  %v1479_v61 = vstv %s1424_s23  ;;  %s1252_s5 = sld [smem:[#allocation2 + $0x10]]  ;;  %v125_v0 = vmul.f32 %v124_v59, %v1433_v39 }
  0x22   :  { %2860 = vst [vmem:[#allocation13_spill] sm:$0xff] %v1464_v54  ;;  %2862 = vst [vmem:[#allocation15_spill] sm:$0xff] %v1479_v61  ;;  %v98_v62 = vadd.f32 %v91_v55, %v1464_v54  ;;  %v1482_v63 = vadd.f32 %v107_v53, %v106_v56  ;;  %v129_v2 = vmul.f32 %v1479_v61, %v1439_v43  ;;  %s1487_s6 = sld [smem:[#allocation2 + $0x11]]  ;;  %v173_v3 = vstv %s1429_s25 }
  0x23   :  { %v175_v4 = vstv %s1435_s27  ;;  %v1492_v5 = vstv %s1431_s26  ;;  %v192_v6 = vstv %s1445_s28  ;;  %s1495_s7 = sld [smem:[#allocation2 + $0x12]]  ;;  %v1498_v8 = vadd.f32 %v126_v60, %v125_v0 }
  0x24   :  { %2863 = vst [vmem:[#allocation16_spill] sm:$0xff] %v1482_v63  ;;  %2864 = vst [vmem:[#allocation17_spill] sm:$0xff] %v1492_v5  ;;  %v117_v7 = vadd.f32 %v110_v58, %v1482_v63  ;;  %v174_v9 = vmul.f32 %v173_v3, %v1433_v39  ;;  %v178_v10 = vmul.f32 %v1492_v5, %v1439_v43  ;;  %s1255_s8 = sld [smem:[#allocation2 + $0x13]]  ;;  %v1506_v13 = vstv %s1454_s29 }
  0x25   :  { %2865 = vst [vmem:[#allocation18_spill] sm:$0xff] %v1498_v8  ;;  %v193_v11 = vmul.f32 %v192_v6, %v1433_v39  ;;  %v194_v12 = vstv %s1462_s30  ;;  %2866 = vst [vmem:[#allocation19_spill] sm:$0xff] %v1506_v13  ;;  %s1508_s9 = sld [smem:[#allocation2 + $0x14]]  ;;  %vm1149_vm0 = vcmp.lt.s32.totalorder %v1411_v1, 48  ;;  %v136_v14 = vadd.f32 %v129_v2, %v1498_v8 }
  0x26   :  { %v1512_v15 = vadd.f32 %v175_v4, %v174_v9  ;;  %v197_v16 = vmul.f32 %v1506_v13, %v1439_v43  ;;  %v211_v17 = vstv %s1472_s4  ;;  %s1517_s10 = sld [smem:[#allocation2 + $0x15]]  ;;  %v2723_v21 = vmov 0.0  }
  0x27   :  { %v1519_v18 = vadd.f32 %v194_v12, %v193_v11  ;;  %v212_v19 = vmul.f32 %v211_v17, %v1433_v39  ;;  %v1522_v20 = vstv %s1252_s5  ;;  %s1258_s11 = sld [smem:[#allocation2 + $0x16]]  ;;  %v1525_v1 = vsel %vm1149_vm0, 1.0, %v2723_v21 }
  0x28   :  { %2867 = vst [vmem:[#allocation20_spill] sm:$0xff] %v1512_v15  ;;  %2869 = vst [vmem:[#allocation22_spill] sm:$0xff] %v1522_v20  ;;  %v143_v22 = vmin.f32 %v117_v7, %v136_v14  ;;  %v185_v23 = vadd.f32 %v178_v10, %v1512_v15  ;;  %v213_v24 = vstv %s1487_s6  ;;  %v216_v25 = vmul.f32 %v1522_v20, %v1439_v43  ;;  %s1531_s12 = sld [smem:[#allocation2 + $0x17]] }
  0x29   :  { %2868 = vst [vmem:[#allocation21_spill] sm:$0xff] %v1519_v18  ;;  %2870 = vst [vmem:[#allocation23_spill] sm:$0xff] %v1525_v1  ;;  %v204_v26 = vadd.f32 %v197_v16, %v1519_v18  ;;  %v1534_v27 = vadd.f32 %v213_v24, %v212_v19  ;;  %s1536_s13 = sld [smem:[#allocation2 + $0x18]]  ;;  %v260_v28 = vstv %s1495_s7  ;;  %v93_v29 = vmul.f32 %v1458_v51, %v1443_v45 }
  0x2a   :  { %v150_v30 = vmin.f32 %v98_v62, %v143_v22  ;;  %s1261_s14 = sld [smem:[#allocation2 + $0x19]]  ;;  %v261_v31 = vmul.f32 %v260_v28, %v1433_v39  ;;  %v1542_v32 = vstv %s1255_s8  ;;  %v112_v33 = vmul.f32 %v1470_v57, %v1443_v45 }
  0x2b   :  { %2871 = vst [vmem:[#allocation24_spill] sm:$0xff] %v1534_v27  ;;  %2872 = vst [vmem:[#allocation25_spill] sm:$0xff] %v1542_v32  ;;  %v223_v34 = vadd.f32 %v216_v25, %v1534_v27  ;;  %s1547_s15 = sld [smem:[#allocation2 + $0x1a]]  ;;  %v262_v35 = vstv %s1508_s9  ;;  %v265_v36 = vmul.f32 %v1542_v32, %v1439_v43  ;;  %v100_v37 = vadd.f32 %v93_v29, %v1464_v54 }
  0x2c   :  { %v157_v38 = vmax.f32 %v150_v30, -3e+38  ;;  %v1553_v40 = vadd.f32 %v262_v35, %v261_v31  ;;  %v279_v41 = vstv %s1517_s10  ;;  %s1556_s16 = sld [smem:[#allocation2 + $0x1b]]  ;;  %v119_v49 = vadd.f32 %v112_v33, %v1482_v63 }
  0x2d   :  { %v230_v50 = vmin.f32 %v204_v26, %v223_v34  ;;  %v280_v52 = vmul.f32 %v279_v41, %v1433_v39  ;;  %v1560_v53 = vstv %s1258_s11  ;;  %s1264_s17 = sld [smem:[#allocation2 + $0x1c]]  ;;  %v131_v55 = vmul.f32 %v1479_v61, %v1443_v45 }
  0x2e   :  { %v272_v56 = vadd.f32 %v265_v36, %v1553_v40  ;;  %v281_v58 = vstv %s1531_s12  ;;  %v284_v59 = vmul.f32 %v1560_v53, %v1439_v43  ;;  %s1568_s18 = sld [smem:[#allocation2 + $0x1d]]  ;;  %v180_v60 = vmul.f32 %v1492_v5, %v1443_v45 }
  0x2f   :  { %v237_v62 = vmin.f32 %v185_v23, %v230_v50  ;;  %v1572_v0 = vadd.f32 %v281_v58, %v280_v52  ;;  %v298_v2 = vstv %s1536_s13  ;;  %s1575_s0 = sld [smem:[#allocation2 + $0x1e]]  ;;  %v138_v3 = vadd.f32 %v131_v55, %v1498_v8 }
  0x30   :  { %v299_v4 = vmul.f32 %v298_v2, %v1433_v39  ;;  %v1579_v6 = vstv %s1261_s14  ;;  %s1267_s19 = sld [smem:[#allocation2 + $0x1f]]  ;;  %v187_v7 = vadd.f32 %v180_v60, %v1512_v15  ;;  %v199_v9 = vmul.f32 %v1506_v13, %v1443_v45 }
  0x31   :  { %v1584_v10 = vmax.f32 %v157_v38, %v237_v62  ;;  %v291_v11 = vadd.f32 %v284_v59, %v1572_v0  ;;  %v300_v12 = vstv %s1547_s15  ;;  %v303_v14 = vmul.f32 %v1579_v6, %v1439_v43  ;;  %s1590_s20 = sld [smem:[#allocation2 + $0x20]] }
  0x32   :  { %v1592_v16 = vadd.f32 %v300_v12, %v299_v4  ;;  %s1594_s21 = sld [smem:[#allocation2 + $0x21]]  ;;  %v347_v17 = vstv %s1556_s16  ;;  %v145_v19 = vmin.f32 %v119_v49, %v138_v3  ;;  %v206_v22 = vadd.f32 %v199_v9, %v1519_v18 }
  0x33   :  { %s1598_s22 = sld [smem:[#allocation2 + $0x22]]  ;;  %v348_v23 = vmul.f32 %v347_v17, %v1433_v39  ;;  %v1601_v24 = vstv %s1264_s17  ;;  %v218_v25 = vmul.f32 %v1522_v20, %v1443_v45  ;;  %v267_v26 = vmul.f32 %v1542_v32, %v1443_v45 }
  0x34   :  { %v310_v28 = vadd.f32 %v303_v14, %v1592_v16  ;;  %s1608_s23 = sld [smem:[#allocation2 + $0x23]]  ;;  %v349_v29 = vstv %s1568_s18  ;;  %v352_v30 = vmul.f32 %v1601_v24, %v1439_v43  ;;  %v152_v31 = vmin.f32 %v100_v37, %v145_v19 }
  0x35   :  { %v1613_v33 = vadd.f32 %v349_v29, %v348_v23  ;;  %v366_v34 = vstv %s1575_s0  ;;  %s1616_s24 = sld [smem:[#allocation2 + $0x24]]  ;;  %v225_v35 = vadd.f32 %v218_v25, %v1534_v27  ;;  %v274_v36 = vadd.f32 %v267_v26, %v1553_v40 }
  0x36   :  { %v317_v38 = vmin.f32 %v291_v11, %v310_v28  ;;  %v367_v41 = vmul.f32 %v366_v34, %v1433_v39  ;;  %v1621_v49 = vstv %s1267_s19  ;;  %s1273_s25 = sld [smem:[#allocation2 + $0x25]]  ;;  %v159_v50 = vmax.f32 %v152_v31, -3e+38 }
  0x37   :  { %v359_v37 = vadd.f32 %v352_v30, %v1613_v33  ;;  %v368_v52 = vstv %s1590_s20  ;;  %v371_v55 = vmul.f32 %v1621_v49, %v1439_v43  ;;  %s1627_s26 = sld [smem:[#allocation2 + $0x26]]  ;;  %v232_v58 = vmin.f32 %v206_v22, %v225_v35 }
  0x38   :  { %v324_v59 = vmin.f32 %v272_v56, %v317_v38  ;;  %v1629_v60 = vadd.f32 %v368_v52, %v367_v41  ;;  %v385_v62 = vstv %s1594_s21  ;;  %s1632_s27 = sld [smem:[#allocation2 + $0x27]]  ;;  %v286_v2 = vmul.f32 %v1560_v53, %v1443_v45 }
  0x39   :  { %v386_v3 = vmul.f32 %v385_v62, %v1433_v39  ;;  %v1638_v4 = vstv %s1598_s22  ;;  %s1276_s28 = sld [smem:[#allocation2 + $0x28]]  ;;  %v239_v9 = vmin.f32 %v187_v7, %v232_v58  ;;  %v305_v11 = vmul.f32 %v1579_v6, %v1443_v45 }
  0x3a   :  { %v331_v56 = vmax.f32 %v1584_v10, %v324_v59  ;;  %v378_v12 = vadd.f32 %v371_v55, %v1629_v60  ;;  %v387_v14 = vstv %s1608_s23  ;;  %v390_v17 = vmul.f32 %v1638_v4, %v1439_v43  ;;  %s1647_s29 = sld [smem:[#allocation2 + $0x29]] }
  0x3b   :  { %v1649_v19 = vadd.f32 %v387_v14, %v386_v3  ;;  %s1651_s30 = sld [smem:[#allocation2 + $0x2a]]  ;;  %v434_v7 = vstv %s1616_s24  ;;  %v1654_v22 = vmax.f32 %v159_v50, %v239_v9  ;;  %v293_v23 = vadd.f32 %v286_v2, %v1572_v0 }
  0x3c   :  { %s1657_s4 = sld [smem:[#allocation2 + $0x2b]]  ;;  %v435_v10 = vmul.f32 %v434_v7, %v1433_v39  ;;  %v1660_v25 = vstv %s1273_s25  ;;  %v312_v26 = vadd.f32 %v305_v11, %v1592_v16  ;;  %v354_v28 = vmul.f32 %v1601_v24, %v1443_v45 }
  0x3d   :  { %v397_v29 = vadd.f32 %v390_v17, %v1649_v19  ;;  %s1666_s5 = sld [smem:[#allocation2 + $0x2c]]  ;;  %v436_v30 = vstv %s1627_s26  ;;  %v439_v31 = vmul.f32 %v1660_v25, %v1439_v43  ;;  %v373_v34 = vmul.f32 %v1621_v49, %v1443_v45 }
  0x3e   :  { %v1673_v35 = vadd.f32 %v436_v30, %v435_v10  ;;  %v453_v38 = vstv %s1632_s27  ;;  %s1676_s6 = sld [smem:[#allocation2 + $0x2d]]  ;;  %v319_v41 = vmin.f32 %v293_v23, %v312_v26  ;;  %v361_v50 = vadd.f32 %v354_v28, %v1613_v33 }
  0x3f   :  { %v404_v52 = vmin.f32 %v378_v12, %v397_v29  ;;  %v454_v55 = vmul.f32 %v453_v38, %v1433_v39  ;;  %v1680_v58 = vstv %s1276_s28  ;;  %s1282_s7 = sld [smem:[#allocation2 + $0x2e]]  ;;  %v380_v59 = vadd.f32 %v373_v34, %v1629_v60 }
  0x40   :  { %v446_v62 = vadd.f32 %v439_v31, %v1673_v35  ;;  %v455_v2 = vstv %s1647_s29  ;;  %v458_v3 = vmul.f32 %v1680_v58, %v1439_v43  ;;  %s1687_s8 = sld [smem:[#allocation2 + $0x2f]]  ;;  %v326_v9 = vmin.f32 %v274_v36, %v319_v41 }
  0x41   :  { %v411_v11 = vmin.f32 %v359_v37, %v404_v52  ;;  %v1689_v12 = vadd.f32 %v455_v2, %v454_v55  ;;  %v472_v14 = vstv %s1651_s30  ;;  %s1692_s9 = sld [smem:[#allocation2 + $0x30]]  ;;  %v392_v17 = vmul.f32 %v1638_v4, %v1443_v45 }
  0x42   :  { %v473_v7 = vmul.f32 %v472_v14, %v1433_v39  ;;  %v1698_v23 = vstv %s1657_s4  ;;  %s1285_s10 = sld [smem:[#allocation2 + $0x31]]  ;;  %v333_v10 = vmax.f32 %v1654_v22, %v326_v9  ;;  %v441_v36 = vmul.f32 %v1660_v25, %v1443_v45 }
  0x43   :  { %2873 = vst [vmem:[#allocation26_spill] sm:$0xff] %v1689_v12  ;;  %2874 = vst [vmem:[#allocation27_spill] sm:$0xff] %v1698_v23  ;;  %v1703_v37 = vmax.f32 %v331_v56, %v411_v11  ;;  %v465_v26 = vadd.f32 %v458_v3, %v1689_v12  ;;  %v474_v28 = vstv %s1666_s5  ;;  %v477_v29 = vmul.f32 %v1698_v23, %v1439_v43  ;;  %s1709_s11 = sld [smem:[#allocation2 + $0x32]] }
  0x44   :  { %v1711_v30 = vadd.f32 %v474_v28, %v473_v7  ;;  %s1713_s12 = sld [smem:[#allocation2 + $0x33]]  ;;  %v521_v22 = vstv %s1676_s6  ;;  %v399_v31 = vadd.f32 %v392_v17, %v1649_v19  ;;  %v448_v56 = vadd.f32 %v441_v36, %v1673_v35 }
  0x45   :  { %s1718_s13 = sld [smem:[#allocation2 + $0x34]]  ;;  %v522_v34 = vmul.f32 %v521_v22, %v1433_v39  ;;  %v1721_v38 = vstv %s1282_s7  ;;  %v460_v41 = vmul.f32 %v1680_v58, %v1443_v45  ;;  %v479_v52 = vmul.f32 %v1698_v23, %v1443_v45 }
  0x46   :  { %2875 = vst [vmem:[#allocation28_spill] sm:$0xff] %v1711_v30  ;;  %2876 = vst [vmem:[#allocation29_spill] sm:$0xff] %v1721_v38  ;;  %v484_v55 = vadd.f32 %v477_v29, %v1711_v30  ;;  %s1728_s14 = sld [smem:[#allocation2 + $0x35]]  ;;  %v523_v2 = vstv %s1687_s8  ;;  %v526_v3 = vmul.f32 %v1721_v38, %v1439_v43  ;;  %v406_v9 = vmin.f32 %v380_v59, %v399_v31 }
  0x47   :  { %v1733_v11 = vadd.f32 %v523_v2, %v522_v34  ;;  %v540_v14 = vstv %s1692_s9  ;;  %s1736_s15 = sld [smem:[#allocation2 + $0x36]]  ;;  %v467_v17 = vadd.f32 %v460_v41, %v1689_v12  ;;  %v486_v7 = vadd.f32 %v479_v52, %v1711_v30 }
  0x48   :  { %v491_v36 = vmin.f32 %v465_v26, %v484_v55  ;;  %v541_v28 = vmul.f32 %v540_v14, %v1433_v39  ;;  %v1741_v29 = vstv %s1285_s10  ;;  %s1291_s16 = sld [smem:[#allocation2 + $0x37]]  ;;  %v413_v22 = vmin.f32 %v361_v50, %v406_v9 }
  0x49   :  { %2877 = vst [vmem:[#allocation30_spill] sm:$0xff] %v1733_v11  ;;  %2878 = vst [vmem:[#allocation31_spill] sm:$0xff] %v1741_v29  ;;  %v533_v59 = vadd.f32 %v526_v3, %v1733_v11  ;;  %v542_v31 = vstv %s1709_s11  ;;  %v545_v34 = vmul.f32 %v1741_v29, %v1439_v43  ;;  %s1747_s17 = sld [smem:[#allocation2 + $0x38]]  ;;  %v493_v41 = vmin.f32 %v467_v17, %v486_v7 }
  0x4a   :  { %v498_v2 = vmin.f32 %v446_v62, %v491_v36  ;;  %v1749_v52 = vadd.f32 %v542_v31, %v541_v28  ;;  %v559_v26 = vstv %s1713_s12  ;;  %s1752_s18 = sld [smem:[#allocation2 + $0x39]]  ;;  %v420_v55 = vmax.f32 %v333_v10, %v413_v22 }
  0x4b   :  { %v560_v50 = vmul.f32 %v559_v26, %v1433_v39  ;;  %v1756_v9 = vstv %s1718_s13  ;;  %s1294_s0 = sld [smem:[#allocation2 + $0x3a]]  ;;  %v500_v3 = vmin.f32 %v448_v56, %v493_v41  ;;  %v528_v14 = vmul.f32 %v1721_v38, %v1443_v45 }
  0x4c   :  { %2879 = vst [vmem:[#allocation32_spill] sm:$0xff] %v1749_v52  ;;  %2880 = vst [vmem:[#allocation33_spill] sm:$0xff] %v1756_v9  ;;  %v505_v21 = vmax.f32 %v1703_v37, %v498_v2  ;;  %v552_v62 = vadd.f32 %v545_v34, %v1749_v52  ;;  %v561_v17 = vstv %s1728_s14  ;;  %v564_v7 = vmul.f32 %v1756_v9, %v1439_v43  ;;  %s1765_s19 = sld [smem:[#allocation2 + $0x3b]] }
  0x4d   :  { %v1767_v10 = vadd.f32 %v561_v17, %v560_v50  ;;  %s1769_s20 = sld [smem:[#allocation2 + $0x3c]]  ;;  %v608_v56 = vstv %s1736_s15  ;;  %v507_v36 = vmax.f32 %v420_v55, %v500_v3  ;;  %v535_v28 = vadd.f32 %v528_v14, %v1733_v11 }
  0x4e   :  { %s1773_s21 = sld [smem:[#allocation2 + $0x3d]]  ;;  %v609_v37 = vmul.f32 %v608_v56, %v1433_v39  ;;  %v1776_v22 = vstv %s1291_s16  ;;  %v547_v31 = vmul.f32 %v1741_v29, %v1443_v45  ;;  %v566_v34 = vmul.f32 %v1756_v9, %v1443_v45 }
  0x4f   :  { %2881 = vst [vmem:[#allocation34_spill] sm:$0xff] %v1767_v10  ;;  %2882 = vst [vmem:[#allocation35_spill] sm:$0xff] %v1776_v22  ;;  %v571_v41 = vadd.f32 %v564_v7, %v1767_v10  ;;  %s1783_s22 = sld [smem:[#allocation2 + $0x3e]]  ;;  %v610_v2 = vstv %s1747_s17  ;;  %v613_v26 = vmul.f32 %v1776_v22, %v1439_v43  ;;  %v615_v55 = vmul.f32 %v1776_v22, %v1443_v45 }
  0x50   :  { %v1790_v50 = vadd.f32 %v610_v2, %v609_v37  ;;  %v627_v3 = vstv %s1752_s18  ;;  %s1793_s23 = sld [smem:[#allocation2 + $0x3f]]  ;;  %v554_v14 = vadd.f32 %v547_v31, %v1749_v52  ;;  %v573_v17 = vadd.f32 %v566_v34, %v1767_v10 }
  0x51   :  { %v578_v7 = vmin.f32 %v552_v62, %v571_v41  ;;  %v628_v56 = vmul.f32 %v627_v3, %v1433_v39  ;;  %v1798_v48 = vstv %s1294_s0  ;;  %s1300_s24 = sld [smem:[#allocation2 + $0x40]]  ;;  %v92_v47 = vmul.f32 %v1458_v51, %v1441_v44 }
  0x52   :  { %2883 = vst [vmem:[#allocation36_spill] sm:$0xff] %v1790_v50  ;;  %2884 = vst [vmem:[#allocation37_spill] sm:$0xff] %v1798_v48  ;;  %v620_v37 = vadd.f32 %v613_v26, %v1790_v50  ;;  %v629_v2 = vstv %s1765_s19  ;;  %v632_v46 = vmul.f32 %v1798_v48, %v1439_v43  ;;  %s1806_s25 = sld [smem:[#allocation2 + $0x41]]  ;;  %v580_v31 = vmin.f32 %v554_v14, %v573_v17 }
  0x53   :  { %v585_v62 = vmin.f32 %v533_v59, %v578_v7  ;;  %v1808_v34 = vadd.f32 %v629_v2, %v628_v56  ;;  %v646_v41 = vstv %s1769_s20  ;;  %s1811_s26 = sld [smem:[#allocation2 + $0x42]]  ;;  %v622_v3 = vadd.f32 %v615_v55, %v1790_v50 }
  0x54   :  { %v647_v51 = vmul.f32 %v646_v41, %v1433_v39  ;;  %v1816_v26 = vstv %s1773_s21  ;;  %s1303_s27 = sld [smem:[#allocation2 + $0x43]]  ;;  %v587_v42 = vmin.f32 %v535_v28, %v580_v31  ;;  %v634_v1 = vmul.f32 %v1798_v48, %v1443_v45 }
  0x55   :  { %2885 = vst [vmem:[#allocation38_spill] sm:$0xff] %v1808_v34  ;;  %2886 = vst [vmem:[#allocation39_spill] sm:$0xff] %v1816_v26  ;;  %v1820_v22 = vmax.f32 %v505_v21, %v585_v62  ;;  %v639_v59 = vadd.f32 %v632_v46, %v1808_v34  ;;  %v648_v14 = vstv %s1783_s22  ;;  %v651_v17 = vmul.f32 %v1816_v26, %v1439_v43  ;;  %s1826_s28 = sld [smem:[#allocation2 + $0x44]] }
  0x56   :  { %v1828_v55 = vadd.f32 %v648_v14, %v647_v51  ;;  %s1830_s29 = sld [smem:[#allocation2 + $0x45]]  ;;  %v695_v28 = vstv %s1793_s23  ;;  %v1833_v7 = vmax.f32 %v507_v36, %v587_v42  ;;  %v641_v21 = vadd.f32 %v634_v1, %v1808_v34 }
  0x57   :  { %s1836_s30 = sld [smem:[#allocation2 + $0x46]]  ;;  %v696_v46 = vmul.f32 %v695_v28, %v1433_v39  ;;  %v1839_v56 = vstv %s1300_s24  ;;  %v653_v2 = vmul.f32 %v1816_v26, %v1443_v45  ;;  %v1844_v51 = vadd.f32 %v92_v47, %v1464_v54 }
  0x58   :  { %2887 = vst [vmem:[#allocation40_spill] sm:$0xff] %v1828_v55  ;;  %2888 = vst [vmem:[#allocation41_spill] sm:$0xff] %v1839_v56  ;;  %v658_v31 = vadd.f32 %v651_v17, %v1828_v55  ;;  %s1847_s4 = sld [smem:[#allocation2 + $0x47]]  ;;  %v697_v42 = vstv %s1806_s25  ;;  %v700_v1 = vmul.f32 %v1839_v56, %v1439_v43  ;;  %v702_v36 = vmul.f32 %v1839_v56, %v1443_v45 }
  0x59   :  { %v1854_v62 = vadd.f32 %v697_v42, %v696_v46  ;;  %v714_v41 = vstv %s1811_s26  ;;  %s1857_s5 = sld [smem:[#allocation2 + $0x48]]  ;;  %v660_v47 = vadd.f32 %v653_v2, %v1828_v55  ;;  %v111_v14 = vmul.f32 %v1470_v57, %v1441_v44 }
  0x5a   :  { %v665_v17 = vmin.f32 %v639_v59, %v658_v31  ;;  %v715_v28 = vmul.f32 %v714_v41, %v1433_v39  ;;  %v1863_v54 = vstv %s1303_s27  ;;  %s1309_s6 = sld [smem:[#allocation2 + $0x49]]  ;;  %v130_v46 = vmul.f32 %v1479_v61, %v1441_v44 }
  0x5b   :  { %2889 = vst [vmem:[#allocation42_spill] sm:$0xff] %v1854_v62  ;;  %2890 = vst [vmem:[#allocation43_spill] sm:$0xff] %v1863_v54  ;;  %v707_v42 = vadd.f32 %v700_v1, %v1854_v62  ;;  %v716_v34 = vstv %s1826_s28  ;;  %v719_v2 = vmul.f32 %v1863_v54, %v1439_v43  ;;  %s1871_s7 = sld [smem:[#allocation2 + $0x4a]]  ;;  %v667_v57 = vmin.f32 %v641_v21, %v660_v47 }
  0x5c   :  { %v672_v59 = vmin.f32 %v620_v37, %v665_v17  ;;  %v1873_v31 = vadd.f32 %v716_v34, %v715_v28  ;;  %v733_v41 = vstv %s1830_s29  ;;  %s1876_s8 = sld [smem:[#allocation2 + $0x4b]]  ;;  %v709_v55 = vadd.f32 %v702_v36, %v1854_v62 }
  0x5d   :  { %v734_v61 = vmul.f32 %v733_v41, %v1433_v39  ;;  %v1881_v1 = vstv %s1836_s30  ;;  %s1312_s9 = sld [smem:[#allocation2 + $0x4c]]  ;;  %v674_v50 = vmin.f32 %v622_v3, %v667_v57  ;;  %v721_v56 = vmul.f32 %v1863_v54, %v1443_v45 }
  0x5e   :  { %2891 = vst [vmem:[#allocation44_spill] sm:$0xff] %v1873_v31  ;;  %2892 = vst [vmem:[#allocation45_spill] sm:$0xff] %v1881_v1  ;;  %v679_v21 = vmax.f32 %v1820_v22, %v672_v59  ;;  %v726_v37 = vadd.f32 %v719_v2, %v1873_v31  ;;  %v735_v34 = vstv %s1847_s4  ;;  %v738_v47 = vmul.f32 %v1881_v1, %v1439_v43  ;;  %s1890_s10 = sld [smem:[#allocation2 + $0x4d]] }
  0x5f   :  { %v1892_v36 = vadd.f32 %v735_v34, %v734_v61  ;;  %s1894_s11 = sld [smem:[#allocation2 + $0x4e]]  ;;  %v782_v57 = vstv %s1857_s5  ;;  %v681_v3 = vmax.f32 %v1833_v7, %v674_v50  ;;  %v728_v17 = vadd.f32 %v721_v56, %v1873_v31 }
  0x60   :  { %s1899_s12 = sld [smem:[#allocation2 + $0x4f]]  ;;  %v783_v22 = vmul.f32 %v782_v57, %v1433_v39  ;;  %v1902_v28 = vstv %s1309_s6  ;;  %v740_v2 = vmul.f32 %v1881_v1, %v1443_v45  ;;  %v118_v61 = vadd.f32 %v111_v14, %v1482_v63 }
  0x61   :  { %2893 = vst [vmem:[#allocation46_spill] sm:$0xff] %v1892_v36  ;;  %2894 = vst [vmem:[#allocation47_spill] sm:$0xff] %v1902_v28  ;;  %v745_v59 = vadd.f32 %v738_v47, %v1892_v36  ;;  %s1908_s13 = sld [smem:[#allocation2 + $0x50]]  ;;  %v784_v41 = vstv %s1871_s7  ;;  %v787_v50 = vmul.f32 %v1902_v28, %v1439_v43  ;;  %v789_v7 = vmul.f32 %v1902_v28, %v1443_v45 }
  0x62   :  { %v1915_v56 = vadd.f32 %v784_v41, %v783_v22  ;;  %v801_v34 = vstv %s1876_s8  ;;  %s1918_s14 = sld [smem:[#allocation2 + $0x51]]  ;;  %v747_v14 = vadd.f32 %v740_v2, %v1892_v36  ;;  %v137_v47 = vadd.f32 %v130_v46, %v1498_v8 }
  0x63   :  { %v752_v57 = vmin.f32 %v726_v37, %v745_v59  ;;  %v802_v63 = vmul.f32 %v801_v34, %v1433_v39  ;;  %v1923_v31 = vstv %s1312_s9  ;;  %s1318_s15 = sld [smem:[#allocation2 + $0x52]]  ;;  %v179_v28 = vmul.f32 %v1492_v5, %v1441_v44 }
  0x64   :  { %2895 = vst [vmem:[#allocation48_spill] sm:$0xff] %v1915_v56  ;;  %2896 = vst [vmem:[#allocation49_spill] sm:$0xff] %v1923_v31  ;;  %v794_v22 = vadd.f32 %v787_v50, %v1915_v56  ;;  %v803_v41 = vstv %s1890_s10  ;;  %v806_v1 = vmul.f32 %v1923_v31, %v1439_v43  ;;  %s1931_s16 = sld [smem:[#allocation2 + $0x53]]  ;;  %v754_v46 = vmin.f32 %v728_v17, %v747_v14 }
  0x65   :  { %v759_v37 = vmin.f32 %v707_v42, %v752_v57  ;;  %v1933_v2 = vadd.f32 %v803_v41, %v802_v63  ;;  %v820_v59 = vstv %s1894_s11  ;;  %s1936_s17 = sld [smem:[#allocation2 + $0x54]]  ;;  %v796_v34 = vadd.f32 %v789_v7, %v1915_v56 }
  0x66   :  { %v821_v8 = vmul.f32 %v820_v59, %v1433_v39  ;;  %v1941_v50 = vstv %s1899_s12  ;;  %s1321_s18 = sld [smem:[#allocation2 + $0x55]]  ;;  %v761_v5 = vmin.f32 %v709_v55, %v754_v46  ;;  %v808_v36 = vmul.f32 %v1923_v31, %v1443_v45 }
  0x67   :  { %2897 = vst [vmem:[#allocation50_spill] sm:$0xff] %v1933_v2  ;;  %2898 = vst [vmem:[#allocation51_spill] sm:$0xff] %v1941_v50  ;;  %v1945_v54 = vmax.f32 %v679_v21, %v759_v37  ;;  %v813_v63 = vadd.f32 %v806_v1, %v1933_v2  ;;  %v822_v42 = vstv %s1908_s13  ;;  %v825_v17 = vmul.f32 %v1941_v50, %v1439_v43  ;;  %s1951_s0 = sld [smem:[#allocation2 + $0x56]] }
  0x68   :  { %v1953_v7 = vadd.f32 %v822_v42, %v821_v8  ;;  %s1955_s19 = sld [smem:[#allocation2 + $0x57]]  ;;  %v869_v55 = vstv %s1918_s14  ;;  %v1958_v14 = vmax.f32 %v681_v3, %v761_v5  ;;  %v815_v21 = vadd.f32 %v808_v36, %v1933_v2 }
  0x69   :  { %s1961_s20 = sld [smem:[#allocation2 + $0x58]]  ;;  %v870_v1 = vmul.f32 %v869_v55, %v1433_v39  ;;  %v1964_v57 = vstv %s1318_s15  ;;  %v827_v41 = vmul.f32 %v1941_v50, %v1443_v45  ;;  %v144_v46 = vmin.f32 %v118_v61, %v137_v47 }
  0x6a   :  { %2899 = vst [vmem:[#allocation52_spill] sm:$0xff] %v1953_v7  ;;  %2900 = vst [vmem:[#allocation53_spill] sm:$0xff] %v1964_v57  ;;  %v832_v8 = vadd.f32 %v825_v17, %v1953_v7  ;;  %s1969_s21 = sld [smem:[#allocation2 + $0x59]]  ;;  %v871_v37 = vstv %s1931_s16  ;;  %v874_v5 = vmul.f32 %v1964_v57, %v1439_v43  ;;  %v876_v36 = vmul.f32 %v1964_v57, %v1443_v45 }
  0x6b   :  { %v1976_v3 = vadd.f32 %v871_v37, %v870_v1  ;;  %v888_v59 = vstv %s1936_s17  ;;  %s1979_s22 = sld [smem:[#allocation2 + $0x5a]]  ;;  %v834_v61 = vadd.f32 %v827_v41, %v1953_v7  ;;  %v1983_v47 = vmin.f32 %v1844_v51, %v144_v46 }
  0x6c   :  { %v839_v42 = vmin.f32 %v813_v63, %v832_v8  ;;  %v889_v17 = vmul.f32 %v888_v59, %v1433_v39  ;;  %v1986_v55 = vstv %s1321_s18  ;;  %s1327_s23 = sld [smem:[#allocation2 + $0x5b]]  ;;  %v1989_v57 = vadd.f32 %v179_v28, %v1512_v15 }
  0x6d   :  { %2901 = vst [vmem:[#allocation54_spill] sm:$0xff] %v1976_v3  ;;  %2902 = vst [vmem:[#allocation55_spill] sm:$0xff] %v1986_v55  ;;  %v881_v1 = vadd.f32 %v874_v5, %v1976_v3  ;;  %v890_v37 = vstv %s1951_s0  ;;  %v893_v41 = vmul.f32 %v1986_v55, %v1439_v43  ;;  %s1995_s24 = sld [smem:[#allocation2 + $0x5c]]  ;;  %v841_v51 = vmin.f32 %v815_v21, %v834_v61 }
  0x6e   :  { %v846_v63 = vmin.f32 %v794_v22, %v839_v42  ;;  %v1997_v46 = vadd.f32 %v890_v37, %v889_v17  ;;  %v907_v8 = vstv %s1955_s19  ;;  %s2000_s25 = sld [smem:[#allocation2 + $0x5d]]  ;;  %v883_v28 = vadd.f32 %v876_v36, %v1976_v3 }
  0x6f   :  { %v908_v59 = vmul.f32 %v907_v8, %v1433_v39  ;;  %v2005_v5 = vstv %s1961_s20  ;;  %s1330_s26 = sld [smem:[#allocation2 + $0x5e]]  ;;  %v848_v15 = vmin.f32 %v796_v34, %v841_v51  ;;  %v895_v7 = vmul.f32 %v1986_v55, %v1443_v45 }
  0x70   :  { %2903 = vst [vmem:[#allocation56_spill] sm:$0xff] %v1997_v46  ;;  %2904 = vst [vmem:[#allocation57_spill] sm:$0xff] %v2005_v5  ;;  %v853_v21 = vmax.f32 %v1945_v54, %v846_v63  ;;  %v900_v22 = vadd.f32 %v893_v41, %v1997_v46  ;;  %v909_v61 = vstv %s1969_s21  ;;  %v912_v42 = vmul.f32 %v2005_v5, %v1439_v43  ;;  %s2014_s27 = sld [smem:[#allocation2 + $0x5f]] }
  0x71   :  { %v2016_v36 = vadd.f32 %v909_v61, %v908_v59  ;;  %s2018_s28 = sld [smem:[#allocation2 + $0x60]]  ;;  %v956_v34 = vstv %s1979_s22  ;;  %v855_v17 = vmax.f32 %v1958_v14, %v848_v15  ;;  %v902_v37 = vadd.f32 %v895_v7, %v1997_v46 }
  0x72   :  { %s2023_s29 = sld [smem:[#allocation2 + $0x61]]  ;;  %v957_v54 = vmul.f32 %v956_v34, %v1433_v39  ;;  %v2026_v41 = vstv %s1327_s23  ;;  %v914_v51 = vmul.f32 %v2005_v5, %v1443_v45 }
  0x73   :  { %2905 = vst [vmem:[#allocation58_spill] sm:$0xff] %v2016_v36  ;;  %2906 = vst [vmem:[#allocation59_spill] sm:$0xff] %v2026_v41  ;;  %v919_v8 = vadd.f32 %v912_v42, %v2016_v36  ;;  %s2032_s30 = sld [smem:[#allocation2 + $0x62]]  ;;  %v958_v59 = vstv %s1995_s24  ;;  %v961_v15 = vmul.f32 %v2026_v41, %v1439_v43  ;;  %v963_v7 = vmul.f32 %v2026_v41, %v1443_v45 }
  0x74   :  { %v2039_v14 = vadd.f32 %v958_v59, %v957_v54  ;;  %v975_v61 = vstv %s2000_s25  ;;  %s2042_s4 = sld [smem:[#allocation2 + $0x63]]  ;;  %v921_v34 = vadd.f32 %v914_v51, %v2016_v36  ;;  %v198_v42 = vmul.f32 %v1506_v13, %v1441_v44 }
  0x75   :  { %v926_v63 = vmin.f32 %v900_v22, %v919_v8  ;;  %v976_v46 = vmul.f32 %v975_v61, %v1433_v39  ;;  %v2048_v3 = vstv %s1330_s26  ;;  %s1336_s5 = sld [smem:[#allocation2 + $0x64]]  ;;  %v217_v54 = vmul.f32 %v1522_v20, %v1441_v44 }
  0x76   :  { %2907 = vst [vmem:[#allocation60_spill] sm:$0xff] %v2039_v14  ;;  %2908 = vst [vmem:[#allocation61_spill] sm:$0xff] %v2048_v3  ;;  %v968_v59 = vadd.f32 %v961_v15, %v2039_v14  ;;  %v977_v41 = vstv %s2014_s27  ;;  %v980_v51 = vmul.f32 %v2048_v3, %v1439_v43  ;;  %s2056_s6 = sld [smem:[#allocation2 + $0x65]]  ;;  %v928_v13 = vmin.f32 %v902_v37, %v921_v34 }
  0x77   :  { %v933_v22 = vmin.f32 %v881_v1, %v926_v63  ;;  %v2058_v8 = vadd.f32 %v977_v41, %v976_v46  ;;  %v994_v61 = vstv %s2018_s28  ;;  %s2061_s7 = sld [smem:[#allocation2 + $0x66]]  ;;  %v970_v36 = vadd.f32 %v963_v7, %v2039_v14 }
  0x78   :  { %v995_v20 = vmul.f32 %v994_v61, %v1433_v39  ;;  %v2066_v15 = vstv %s2023_s29  ;;  %s1339_s8 = sld [smem:[#allocation2 + $0x67]]  ;;  %v935_v5 = vmin.f32 %v883_v28, %v928_v13  ;;  %v982_v55 = vmul.f32 %v2048_v3, %v1443_v45 }
  0x79   :  { %2909 = vst [vmem:[#allocation62_spill] sm:$0xff] %v2058_v8  ;;  %2910 = vst [vmem:[#allocation63_spill] sm:$0xff] %v2066_v15  ;;  %v2070_v2 = vmax.f32 %v853_v21, %v933_v22  ;;  %v987_v1 = vadd.f32 %v980_v51, %v2058_v8  ;;  %v996_v46 = vstv %s2032_s30  ;;  %v999_v37 = vmul.f32 %v2066_v15, %v1439_v43  ;;  %s1340_s9 = sld [smem:[#allocation2 + $0x68]] }
  0x7a   :  { %v2076_v41 = vadd.f32 %v996_v46, %v995_v20  ;;  %s1341_s10 = sld [smem:[#allocation2 + $0x69]]  ;;  %v1043_v63 = vstv %s2042_s4  ;;  %v2079_v7 = vmax.f32 %v855_v17, %v935_v5  ;;  %v989_v13 = vadd.f32 %v982_v55, %v2058_v8 }
  0x7b   :  { %s1342_s11 = sld [smem:[#allocation2 + $0x6a]]  ;;  %v1044_v28 = vmul.f32 %v1043_v63, %v1433_v39  ;;  %v2083_v21 = vstv %s1336_s5  ;;  %v1001_v34 = vmul.f32 %v2066_v15, %v1443_v45  ;;  %v205_v51 = vadd.f32 %v198_v42, %v1519_v18 }
  0x7c   :  { %2911 = vst [vmem:[#allocation64_spill] sm:$0xff] %v2076_v41  ;;  %2912 = vst [vmem:[#allocation65_spill] sm:$0xff] %v2083_v21  ;;  %v1006_v20 = vadd.f32 %v999_v37, %v2076_v41  ;;  %s1343_s12 = sld [smem:[#allocation2 + $0x6b]]  ;;  %v1045_v22 = vstv %s2056_s6  ;;  %v1048_v5 = vmul.f32 %v2083_v21, %v1439_v43  ;;  %v1050_v55 = vmul.f32 %v2083_v21, %v1443_v45 }
  0x7d   :  { %v2094_v17 = vadd.f32 %v1045_v22, %v1044_v28  ;;  %v1062_v61 = vstv %s2061_s7  ;;  %v1008_v46 = vadd.f32 %v1001_v34, %v2076_v41  ;;  %v224_v63 = vadd.f32 %v217_v54, %v1534_v27 }
  0x7e   :  { %v1013_v15 = vmin.f32 %v987_v1, %v1006_v20  ;;  %v1063_v42 = vmul.f32 %v1062_v61, %v1433_v39  ;;  %v2100_v18 = vstv %s1339_s8  ;;  %v266_v37 = vmul.f32 %v1542_v32, %v1441_v44 }
  0x7f   :  { %2913 = vst [vmem:[#allocation66_spill] sm:$0xff] %v2094_v17  ;;  %2914 = vst [vmem:[#allocation67_spill] sm:$0xff] %v2100_v18  ;;  %v1055_v8 = vadd.f32 %v1048_v5, %v2094_v17  ;;  %v1064_v14 = vstv %s1340_s9  ;;  %v1067_v28 = vmul.f32 %v2100_v18, %v1439_v43  ;;  %v1015_v22 = vmin.f32 %v989_v13, %v1008_v46 }
  0x80   :  { %v1020_v21 = vmin.f32 %v968_v59, %v1013_v15  ;;  %v2107_v3 = vadd.f32 %v1064_v14, %v1063_v42  ;;  %v1081_v34 = vstv %s1341_s10  ;;  %v1057_v54 = vadd.f32 %v1050_v55, %v2094_v17 }
  0x81   :  { %v1082_v1 = vmul.f32 %v1081_v34, %v1433_v39  ;;  %v2111_v20 = vstv %s1342_s11  ;;  %v1022_v61 = vmin.f32 %v970_v36, %v1015_v22  ;;  %v1069_v27 = vmul.f32 %v2100_v18, %v1443_v45 }
  0x82   :  { %2915 = vst [vmem:[#allocation68_spill] sm:$0xff] %v2107_v3  ;;  %2916 = vst [vmem:[#allocation69_spill] sm:$0xff] %v2111_v20  ;;  %v1027_v5 = vmax.f32 %v2070_v2, %v1020_v21  ;;  %v1074_v32 = vadd.f32 %v1067_v28, %v2107_v3  ;;  %v1083_v41 = vstv %s1343_s12  ;;  %v1086_v14 = vmul.f32 %v2111_v20, %v1439_v43 }
  0x83   :  { %v2119_v59 = vadd.f32 %v1083_v41, %v1082_v1  ;;  %v1029_v15 = vmax.f32 %v2079_v7, %v1022_v61  ;;  %v1076_v39 = vadd.f32 %v1069_v27, %v2107_v3  ;;  %v1088_v36 = vmul.f32 %v2111_v20, %v1443_v45 }
  0x84   :  { %v231_v13 = vmin.f32 %v205_v51, %v224_v63  ;;  %v273_v55 = vadd.f32 %v266_v37, %v1553_v40  ;;  %v285_v2 = vmul.f32 %v1560_v53, %v1441_v44  ;;  %v304_v21 = vmul.f32 %v1579_v6, %v1441_v44 }
  0x85   :  { %2917 = vst [vmem:[#allocation70_spill] sm:$0xff] %v2119_v59  ;;  %v1093_v43 = vadd.f32 %v1086_v14, %v2119_v59  ;;  %v1095_v41 = vadd.f32 %v1088_v36, %v2119_v59  ;;  %v353_v7 = vmul.f32 %v1601_v24, %v1441_v44  ;;  %v372_v27 = vmul.f32 %v1621_v49, %v1441_v44 }
  0x86   :  { %v238_v45 = vmin.f32 %v1989_v57, %v231_v13  ;;  %v292_v51 = vadd.f32 %v285_v2, %v1572_v0  ;;  %v311_v46 = vadd.f32 %v304_v21, %v1592_v16  ;;  %v391_v63 = vmul.f32 %v1638_v4, %v1441_v44 }
  0x87   :  { %v1100_v42 = vmin.f32 %v1074_v32, %v1093_v43  ;;  %v1102_v37 = vmin.f32 %v1076_v39, %v1095_v41  ;;  %v360_v28 = vadd.f32 %v353_v7, %v1613_v33  ;;  %v379_v22 = vadd.f32 %v372_v27, %v1629_v60 }
  0x88   :  { %v2918_v34 = vmax.f32 %v1983_v47, -3e+38  ;;  %v318_v61 = vmin.f32 %v292_v51, %v311_v46  ;;  %v398_v14 = vadd.f32 %v391_v63, %v1649_v19  ;;  %v440_v57 = vmul.f32 %v1660_v25, %v1441_v44 }
  0x89   :  { %v1107_v36 = vmin.f32 %v1055_v8, %v1100_v42  ;;  %v1109_v13 = vmin.f32 %v1057_v54, %v1102_v37  ;;  %v459_v2 = vmul.f32 %v1680_v58, %v1441_v44  ;;  %v478_v32 = vmul.f32 %v1698_v23, %v1441_v44  ;;  %v1152_v54 = vld [vmem:[%s2720_s1] sm:$0xff] }
  0x8a   :  { %v245_v1 = vmax.f32 %v2918_v34, %v238_v45  ;;  %v325_v39 = vmin.f32 %v273_v55, %v318_v61  ;;  %v405_v21 = vmin.f32 %v379_v22, %v398_v14  ;;  %v447_v43 = vadd.f32 %v440_v57, %v1673_v35  ;;  %v1154_v55 = vld [vmem:[%s2720_s1 + $0x10] sm:$0xff] }
  0x8b   :  { %v527_v47 = vmul.f32 %v1721_v38, %v1441_v44  ;;  %v1114_v41 = vmax.f32 %v1027_v5, %v1107_v36  ;;  %v1116_v7 = vmax.f32 %v1029_v15, %v1109_v13  ;;  %v466_v27 = vadd.f32 %v459_v2, %v1689_v12  ;;  %v2920_v36 = vld [vmem:[#allocation35_spill] sm:$0xff] }
  0x8c   :  { %v485_v8 = vadd.f32 %v478_v32, %v1711_v30  ;;  %v332_v45 = vmax.f32 %v245_v1, %v325_v39  ;;  %v412_v51 = vmin.f32 %v360_v28, %v405_v21  ;;  %v546_v5 = vmul.f32 %v1741_v29, %v1441_v44  ;;  %v2921_v39 = vld [vmem:[#allocation41_spill] sm:$0xff] }
  0x8d   :  { %v534_v46 = vadd.f32 %v527_v47, %v1733_v11  ;;  %vm1121_vm1 = vcmp.ge.f32.partialorder %v1114_v41, 0.0  ;;  %vm1123_vm2 = vcmp.ge.f32.partialorder %v1116_v7, 0.0  ;;  %v565_v63 = vmul.f32 %v1756_v9, %v1441_v44  ;;  %v2922_v47 = vld [vmem:[#allocation23_spill] sm:$0xff] }
  0x8e   :  { %v492_v15 = vmin.f32 %v466_v27, %v485_v8  ;;  %v2919_v42 = vmov 0.0   ;;  %v419_v34 = vmax.f32 %v332_v45, %v412_v51  ;;  %v553_v61 = vadd.f32 %v546_v5, %v1749_v52  ;;  %v2923_v8 = vld [vmem:[#allocation36_spill] sm:$0xff] }
  0x8f   :  { %v1344_v37 = vsel %vm1121_vm1, 1.0, %v2919_v42  ;;  %v1346_v22 = vsel %vm1123_vm2, 1.0, %v2919_v42  ;;  %v572_v57 = vadd.f32 %v565_v63, %v1767_v10  ;;  %v614_v13 = vmul.f32 %v2920_v36, %v1441_v44  ;;  %v2925_v51 = vld [vmem:[#allocation40_spill] sm:$0xff] }
  0x90   :  { %v1159_v1 = vsub.f32 %v1344_v37, %v1152_v54  ;;  %1142 = vst [vmem:[%s2721_s2] sm:$0xff] %v1344_v37  ;;  %v1161_v28 = vsub.f32 %v1346_v22, %v1154_v55  ;;  %1144 = vst [vmem:[%s2721_s2 + $0x10] sm:$0xff] %v1346_v22  ;;  %v499_v14 = vmin.f32 %v447_v43, %v492_v15  ;;  %v2924_v55 = vld [vmem:[#allocation38_spill] sm:$0xff] }
  0x91   :  { %v633_v2 = vmul.f32 %v1798_v48, %v1441_v44  ;;  %v652_v32 = vmul.f32 %v1816_v26, %v1441_v44  ;;  %v701_v21 = vmul.f32 %v2921_v39, %v1441_v44  ;;  %v579_v43 = vmin.f32 %v553_v61, %v572_v57  ;;  %v2926_v26 = vld [vmem:[#allocation43_spill] sm:$0xff]  ;;  %v2929_v57 = vld [vmem:[#allocation8_spill] sm:$0xff] }
  0x92   :  { %v1166_v41 = vmul.f32 %v2922_v47, %v1159_v1  ;;  %v1168_v7 = vmul.f32 %v2922_v47, %v1161_v28  ;;  %v506_v27 = vmax.f32 %v419_v34, %v499_v14  ;;  %v621_v54 = vadd.f32 %v614_v13, %v2923_v8  ;;  %v2927_v1 = vld [vmem:[#allocation45_spill] sm:$0xff]  ;;  %v2928_v34 = vld [vmem:[#allocation47_spill] sm:$0xff] }
  0x93   :  { %v640_v45 = vadd.f32 %v633_v2, %v2924_v55  ;;  %v659_v5 = vadd.f32 %v652_v32, %v2925_v51  ;;  %v708_v15 = vadd.f32 %v701_v21, %v1854_v62  ;;  %v586_v22 = vmin.f32 %v534_v46, %v579_v43  ;;  %v2931_v46 = vld [vmem:[#allocation44_spill] sm:$0xff]  ;;  %v2944_v51 = vld [vmem:[#allocation62_spill] sm:$0xff] }
  0x94   :  { %v1173_v63 = vmul.f32 %v1166_v41, %v1166_v41  ;;  %v1175_v37 = vmul.f32 %v1168_v7, %v1168_v7  ;;  %v720_v39 = vmul.f32 %v2926_v26, %v1441_v44  ;;  %v739_v28 = vmul.f32 %v2927_v1, %v1441_v44  ;;  %v2932_v7 = vld [vmem:[#allocation46_spill] sm:$0xff]  ;;  %v2934_v62 = vld [vmem:[#allocation52_spill] sm:$0xff] }
  0x95   :  { %v666_v48 = vmin.f32 %v640_v45, %v659_v5  ;;  %v788_v61 = vmul.f32 %v2928_v34, %v1441_v44  ;;  %v807_v14 = vmul.f32 %v1923_v31, %v1441_v44  ;;  %v2201_v13 = vadd.f32 0.5, %v2929_v57  ;;  %v2933_v5 = vld [vmem:[#allocation50_spill] sm:$0xff]  ;;  %v2935_v57 = vld [vmem:[#allocation53_spill] sm:$0xff] }
  0x96   :  { %1180 = vadd.xlane.f32.xlu0 %v1173_v63  ;;  %1184 = vadd.xlane.f32.xlu1 %v1175_v37  ;;  %v593_v2 = vmax.f32 %v506_v27, %v586_v22  ;;  %v727_v32 = vadd.f32 %v720_v39, %v2931_v46  ;;  %v826_v21 = vmul.f32 %v1941_v50, %v1441_v44  ;;  %v2936_v63 = vld [vmem:[#allocation55_spill] sm:$0xff]  ;;  %v2937_v39 = vld [vmem:[#allocation57_spill] sm:$0xff] }
  0x97   :  { %2930 = vst [vmem:[#allocation8_spill] sm:$0xff] %v2201_v13  ;;  %v673_v41 = vmin.f32 %v621_v54, %v666_v48  ;;  %v746_v43 = vadd.f32 %v739_v28, %v2932_v7  ;;  %v795_v45 = vadd.f32 %v788_v61, %v1915_v56  ;;  %v814_v34 = vadd.f32 %v807_v14, %v2933_v5  ;;  %v2938_v48 = vld [vmem:[#allocation59_spill] sm:$0xff]  ;;  %v2939_v28 = vld [vmem:[#allocation61_spill] sm:$0xff]  ;;  %v2940_v5 = vld [vmem:[#allocation54_spill] sm:$0xff] }
  0x98   :  { %v833_v31 = vadd.f32 %v826_v21, %v2934_v62  ;;  %v875_v13 = vmul.f32 %v2935_v57, %v1441_v44  ;;  %v894_v27 = vmul.f32 %v2936_v63, %v1441_v44  ;;  %v913_v37 = vmul.f32 %v2937_v39, %v1441_v44  ;;  %v2941_v62 = vld [vmem:[#allocation56_spill] sm:$0xff]  ;;  %v2942_v57 = vld [vmem:[#allocation58_spill] sm:$0xff] }
  0x99   :  { %v680_v22 = vmax.f32 %v593_v2, %v673_v41  ;;  %v753_v50 = vmin.f32 %v727_v32, %v746_v43  ;;  %v962_v54 = vmul.f32 %v2938_v48, %v1441_v44  ;;  %v981_v61 = vmul.f32 %v2939_v28, %v1441_v44  ;;  %v2943_v63 = vld [vmem:[#allocation60_spill] sm:$0xff]  ;;  %v2945_v2 = vld [vmem:[#allocation63_spill] sm:$0xff]  ;;  %v2946_v48 = vld [vmem:[#allocation65_spill] sm:$0xff] }
  0x9a   :  { %v840_v14 = vmin.f32 %v814_v34, %v833_v31  ;;  %v882_v21 = vadd.f32 %v875_v13, %v2940_v5  ;;  %v901_v56 = vadd.f32 %v894_v27, %v2941_v62  ;;  %v920_v7 = vadd.f32 %v913_v37, %v2942_v57  ;;  %v2947_v13 = vld [vmem:[#allocation64_spill] sm:$0xff] }
  0x9b   :  { %v760_v46 = vmin.f32 %v708_v15, %v753_v50  ;;  %v969_v1 = vadd.f32 %v962_v54, %v2943_v63  ;;  %v988_v39 = vadd.f32 %v981_v61, %v2944_v51  ;;  %v1000_v32 = vmul.f32 %v2945_v2, %v1441_v44  ;;  %v2948_v15 = vld [vmem:[#allocation9_spill] sm:$0xff]  ;;  %v2949_v37 = vld [vmem:[#allocation12_spill] sm:$0xff] }
  0x9c   :  { %v847_v41 = vmin.f32 %v795_v45, %v840_v14  ;;  %v927_v43 = vmin.f32 %v901_v56, %v920_v7  ;;  %v1049_v28 = vmul.f32 %v2946_v48, %v1441_v44  ;;  %v1068_v31 = vmul.f32 %v2100_v18, %v1441_v44  ;;  %v2950_v7 = vld [vmem:[#allocation14_spill] sm:$0xff] }
  0x9d   :  { %v767_v34 = vmax.f32 %v680_v22, %v760_v46  ;;  %v1007_v27 = vadd.f32 %v1000_v32, %v2947_v13  ;;  %v1087_v50 = vmul.f32 %v2111_v20, %v1441_v44  ;;  %v94_v54 = vmul.f32 %v2949_v37, %v2948_v15  ;;  %v2951_v22 = vld [vmem:[#allocation13_spill] sm:$0xff]  ;;  %v2952_v13 = vld [vmem:[#allocation16_spill] sm:$0xff]  ;;  %v2953_v44 = vld [vmem:[#allocation15_spill] sm:$0xff] }
  0x9e   :  { %v934_v61 = vmin.f32 %v882_v21, %v927_v43  ;;  %v1056_v51 = vadd.f32 %v1049_v28, %v2094_v17  ;;  %v1075_v56 = vadd.f32 %v1068_v31, %v2107_v3  ;;  %v113_v45 = vmul.f32 %v2950_v7, %v2948_v15  ;;  %v2954_v21 = vld [vmem:[#allocation17_spill] sm:$0xff]  ;;  %v2955_v28 = vld [vmem:[#allocation19_spill] sm:$0xff]  ;;  %v2961_v17 = vld [vmem:[#allocation24_spill] sm:$0xff] }
  0x9f   :  { %v854_v14 = vmax.f32 %v767_v34, %v847_v41  ;;  %v1014_v63 = vmin.f32 %v988_v39, %v1007_v27  ;;  %v1094_v46 = vadd.f32 %v1087_v50, %v2119_v59  ;;  %v101_v32 = vadd.f32 %v94_v54, %v2951_v22  ;;  %v2956_v39 = vld [vmem:[#allocation22_spill] sm:$0xff]  ;;  %v2958_v50 = vld [vmem:[#allocation20_spill] sm:$0xff]  ;;  %v2960_v22 = vld [vmem:[#allocation25_spill] sm:$0xff] }
  0xa0   :  { %v120_v18 = vadd.f32 %v113_v45, %v2952_v13  ;;  %v132_v20 = vmul.f32 %v2953_v44, %v2948_v15  ;;  %v181_v43 = vmul.f32 %v2954_v21, %v2948_v15  ;;  %v200_v31 = vmul.f32 %v2955_v28, %v2948_v15  ;;  %v2957_v34 = vld [vmem:[#allocation18_spill] sm:$0xff]  ;;  %v2959_v45 = vld [vmem:[#allocation21_spill] sm:$0xff] }
  0xa1   :  { %v941_v37 = vmax.f32 %v854_v14, %v934_v61  ;;  %v1021_v3 = vmin.f32 %v969_v1, %v1014_v63  ;;  %v1101_v7 = vmin.f32 %v1075_v56, %v1094_v46  ;;  %v219_v41 = vmul.f32 %v2956_v39, %v2948_v15 }
  0xa2   :  { %v139_v27 = vadd.f32 %v132_v20, %v2957_v34  ;;  %v188_v54 = vadd.f32 %v181_v43, %v2958_v50  ;;  %v207_v13 = vadd.f32 %v200_v31, %v2959_v45  ;;  %v268_v59 = vmul.f32 %v2960_v22, %v2948_v15 }
  0xa3   :  { %v1028_v44 = vmax.f32 %v941_v37, %v1021_v3  ;;  %v1108_v21 = vmin.f32 %v1056_v51, %v1101_v7  ;;  %v226_v48 = vadd.f32 %v219_v41, %v2961_v17  ;;  %v287_v1 = vmul.f32 %v1560_v53, %v2948_v15  ;;  %v1153_v51 = vld [vmem:[%s2720_s1 + $0x8] sm:$0xff] }
  0xa4   :  { %v146_v63 = vmin.f32 %v120_v18, %v139_v27  ;;  %v275_v61 = vadd.f32 %v268_v59, %v1553_v40  ;;  %v306_v20 = vmul.f32 %v1579_v6, %v2948_v15  ;;  %v355_v56 = vmul.f32 %v1601_v24, %v2948_v15 }
  0xa5   :  { %v1115_v14 = vmax.f32 %v1028_v44, %v1108_v21  ;;  %v233_v46 = vmin.f32 %v207_v13, %v226_v48  ;;  %v294_v43 = vadd.f32 %v287_v1, %v1572_v0  ;;  %v374_v3 = vmul.f32 %v1621_v49, %v2948_v15 }
  0xa6   :  { %v153_v18 = vmin.f32 %v101_v32, %v146_v63  ;;  %v313_v59 = vadd.f32 %v306_v20, %v1592_v16  ;;  %v362_v37 = vadd.f32 %v355_v56, %v1613_v33  ;;  %v393_v7 = vmul.f32 %v1638_v4, %v2948_v15 }
  0xa7   :  { %vm1122_vm3 = vcmp.ge.f32.partialorder %v1115_v14, 0.0  ;;  %v240_v44 = vmin.f32 %v188_v54, %v233_v46  ;;  %v381_v48 = vadd.f32 %v374_v3, %v1629_v60  ;;  %v442_v13 = vmul.f32 %v1660_v25, %v2948_v15 }
  0xa8   :  { %v1345_v21 = vsel %vm1122_vm3, 1.0, %v2919_v42  ;;  %v160_v31 = vmax.f32 %v153_v18, -3e+38  ;;  %v320_v41 = vmin.f32 %v294_v43, %v313_v59  ;;  %v400_v32 = vadd.f32 %v393_v7, %v1649_v19 }
  0xa9   :  { %1143 = vst [vmem:[%s2721_s2 + $0x8] sm:$0xff] %v1345_v21  ;;  %v1160_v27 = vsub.f32 %v1345_v21, %v1153_v51  ;;  %v449_v1 = vadd.f32 %v442_v13, %v1673_v35  ;;  %v461_v54 = vmul.f32 %v1680_v58, %v2948_v15  ;;  %v480_v63 = vmul.f32 %v1698_v23, %v2948_v15 }
  0xaa   :  { %v247_v20 = vmax.f32 %v160_v31, %v240_v44  ;;  %v327_v56 = vmin.f32 %v275_v61, %v320_v41  ;;  %v407_v14 = vmin.f32 %v381_v48, %v400_v32  ;;  %v529_v46 = vmul.f32 %v1721_v38, %v2948_v15 }
  0xab   :  { %v1167_v43 = vmul.f32 %v2922_v47, %v1160_v27  ;;  %v468_v3 = vadd.f32 %v461_v54, %v1689_v12  ;;  %v487_v51 = vadd.f32 %v480_v63, %v1711_v30  ;;  %v548_v18 = vmul.f32 %v1741_v29, %v2948_v15  ;;  %v2962_v27 = vld [vmem:[#allocation37_spill] sm:$0xff] }
  0xac   :  { %v334_v59 = vmax.f32 %v247_v20, %v327_v56  ;;  %v414_v7 = vmin.f32 %v362_v37, %v407_v14  ;;  %v536_v13 = vadd.f32 %v529_v46, %v1733_v11  ;;  %v567_v61 = vmul.f32 %v1756_v9, %v2948_v15  ;;  %v2963_v37 = vld [vmem:[#allocation39_spill] sm:$0xff]  ;;  %v2964_v14 = vld [vmem:[#allocation41_spill] sm:$0xff] }
  0xad   :  { %v1174_v44 = vmul.f32 %v1167_v43, %v1167_v43  ;;  %v494_v48 = vmin.f32 %v468_v3, %v487_v51  ;;  %v555_v21 = vadd.f32 %v548_v18, %v1749_v52  ;;  %v616_v31 = vmul.f32 %v2920_v36, %v2948_v15  ;;  %v2965_v18 = vld [vmem:[#allocation40_spill] sm:$0xff]  ;;  %v2970_v36 = vld [vmem:[#allocation46_spill] sm:$0xff] }
  0xae   :  { %v421_v41 = vmax.f32 %v334_v59, %v414_v7  ;;  %v574_v32 = vadd.f32 %v567_v61, %v1767_v10  ;;  %v635_v54 = vmul.f32 %v2962_v27, %v2948_v15  ;;  %v654_v63 = vmul.f32 %v2963_v37, %v2948_v15  ;;  %v2966_v7 = vld [vmem:[#allocation45_spill] sm:$0xff]  ;;  %v2967_v37 = vld [vmem:[#allocation42_spill] sm:$0xff] }
  0xaf   :  { %1182 = vadd.xlane.f32.xlu0 %v1174_v44  ;;  %v501_v20 = vmin.f32 %v449_v1, %v494_v48  ;;  %v623_v56 = vadd.f32 %v616_v31, %v2923_v8  ;;  %v703_v46 = vmul.f32 %v2964_v14, %v2948_v15  ;;  %v722_v43 = vmul.f32 %v2926_v26, %v2948_v15  ;;  %v2968_v1 = vld [vmem:[#allocation44_spill] sm:$0xff]  ;;  %v2969_v31 = vld [vmem:[#allocation47_spill] sm:$0xff] }
  0xb0   :  { %v581_v3 = vmin.f32 %v555_v21, %v574_v32  ;;  %v642_v51 = vadd.f32 %v635_v54, %v2924_v55  ;;  %v661_v59 = vadd.f32 %v654_v63, %v2965_v18  ;;  %v741_v61 = vmul.f32 %v2966_v7, %v2948_v15  ;;  %v2971_v21 = vld [vmem:[#allocation49_spill] sm:$0xff]  ;;  %v2972_v54 = vld [vmem:[#allocation48_spill] sm:$0xff]  ;;  %v2973_v18 = vld [vmem:[#allocation51_spill] sm:$0xff] }
  0xb1   :  { %v508_v27 = vmax.f32 %v421_v41, %v501_v20  ;;  %v710_v44 = vadd.f32 %v703_v46, %v2967_v37  ;;  %v729_v48 = vadd.f32 %v722_v43, %v2968_v1  ;;  %v790_v8 = vmul.f32 %v2969_v31, %v2948_v15  ;;  %v2974_v41 = vld [vmem:[#allocation53_spill] sm:$0xff]  ;;  %v2975_v46 = vld [vmem:[#allocation55_spill] sm:$0xff] }
  0xb2   :  { %v588_v14 = vmin.f32 %v536_v13, %v581_v3  ;;  %v668_v10 = vmin.f32 %v642_v51, %v661_v59  ;;  %v748_v26 = vadd.f32 %v741_v61, %v2970_v36  ;;  %v809_v32 = vmul.f32 %v2971_v21, %v2948_v15  ;;  %v2976_v3 = vld [vmem:[#allocation50_spill] sm:$0xff]  ;;  %v2977_v59 = vld [vmem:[#allocation52_spill] sm:$0xff] }
  0xb3   :  { %v797_v63 = vadd.f32 %v790_v8, %v2972_v54  ;;  %v828_v7 = vmul.f32 %v2973_v18, %v2948_v15  ;;  %v877_v20 = vmul.f32 %v2974_v41, %v2948_v15  ;;  %v896_v43 = vmul.f32 %v2975_v46, %v2948_v15  ;;  %v2978_v54 = vld [vmem:[#allocation57_spill] sm:$0xff]  ;;  %v2979_v41 = vld [vmem:[#allocation59_spill] sm:$0xff] }
  0xb4   :  { %v595_v1 = vmax.f32 %v508_v27, %v588_v14  ;;  %v675_v31 = vmin.f32 %v623_v56, %v668_v10  ;;  %v755_v13 = vmin.f32 %v729_v48, %v748_v26  ;;  %v816_v51 = vadd.f32 %v809_v32, %v2976_v3  ;;  %v2980_v27 = vld [vmem:[#allocation61_spill] sm:$0xff] }
  0xb5   :  { %v835_v61 = vadd.f32 %v828_v7, %v2977_v59  ;;  %v884_v21 = vadd.f32 %v877_v20, %v2940_v5  ;;  %v903_v8 = vadd.f32 %v896_v43, %v2941_v62  ;;  %v915_v18 = vmul.f32 %v2978_v54, %v2948_v15  ;;  %v2981_v7 = vld [vmem:[#allocation65_spill] sm:$0xff]  ;;  %v2982_v20 = vld [vmem:[#allocation60_spill] sm:$0xff] }
  0xb6   :  { %v682_v36 = vmax.f32 %v595_v1, %v675_v31  ;;  %v762_v37 = vmin.f32 %v710_v44, %v755_v13  ;;  %v964_v55 = vmul.f32 %v2979_v41, %v2948_v15  ;;  %v983_v10 = vmul.f32 %v2980_v27, %v2948_v15  ;;  %v2983_v1 = vld [vmem:[#allocation62_spill] sm:$0xff]  ;;  %v2984_v31 = vld [vmem:[#allocation67_spill] sm:$0xff]  ;;  %v2985_v27 = vld [vmem:[#allocation64_spill] sm:$0xff] }
  0xb7   :  { %v842_v26 = vmin.f32 %v816_v51, %v835_v61  ;;  %v922_v56 = vadd.f32 %v915_v18, %v2942_v57  ;;  %v1002_v14 = vmul.f32 %v2945_v2, %v2948_v15  ;;  %v1051_v48 = vmul.f32 %v2981_v7, %v2948_v15  ;;  %v2986_v61 = vld [vmem:[#allocation66_spill] sm:$0xff]  ;;  %v2987_v57 = vld [vmem:[#allocation68_spill] sm:$0xff]  ;;  %v2988_v2 = vld [vmem:[#allocation69_spill] sm:$0xff] }
  0xb8   :  { %v769_v32 = vmax.f32 %v682_v36, %v762_v37  ;;  %v971_v43 = vadd.f32 %v964_v55, %v2982_v20  ;;  %v990_v44 = vadd.f32 %v983_v10, %v2983_v1  ;;  %v1070_v13 = vmul.f32 %v2984_v31, %v2948_v15  ;;  %v2989_v7 = vld [vmem:[#allocation10_spill] sm:$0xff]  ;;  %v2990_v36 = vld [vmem:[#allocation12_spill] sm:$0xff] }
  0xb9   :  { %v849_v41 = vmin.f32 %v797_v63, %v842_v26  ;;  %v929_v62 = vmin.f32 %v903_v8, %v922_v56  ;;  %v1009_v51 = vadd.f32 %v1002_v14, %v2985_v27  ;;  %v1058_v18 = vadd.f32 %v1051_v48, %v2986_v61  ;;  %v2991_v55 = vld [vmem:[#allocation14_spill] sm:$0xff]  ;;  %v2992_v63 = vld [vmem:[#allocation15_spill] sm:$0xff]  ;;  %v2994_v14 = vld [vmem:[#allocation13_spill] sm:$0xff] }
  0xba   :  { %v1077_v54 = vadd.f32 %v1070_v13, %v2987_v57  ;;  %v1089_v5 = vmul.f32 %v2988_v2, %v2948_v15  ;;  %v95_v37 = vmul.f32 %v2990_v36, %v2989_v7  ;;  %v114_v10 = vmul.f32 %v2991_v55, %v2989_v7  ;;  %v2993_v26 = vld [vmem:[#allocation70_spill] sm:$0xff]  ;;  %v2995_v13 = vld [vmem:[#allocation16_spill] sm:$0xff]  ;;  %v2996_v15 = vld [vmem:[#allocation17_spill] sm:$0xff] }
  0xbb   :  { %v856_v1 = vmax.f32 %v769_v32, %v849_v41  ;;  %v936_v20 = vmin.f32 %v884_v21, %v929_v62  ;;  %v1016_v31 = vmin.f32 %v990_v44, %v1009_v51  ;;  %v133_v8 = vmul.f32 %v2992_v63, %v2989_v7 }
  0xbc   :  { %v1096_v56 = vadd.f32 %v1089_v5, %v2993_v26  ;;  %v102_v48 = vadd.f32 %v95_v37, %v2994_v14  ;;  %v121_v57 = vadd.f32 %v114_v10, %v2995_v13  ;;  %v182_v2 = vmul.f32 %v2996_v15, %v2989_v7 }
  0xbd   :  { %v943_v61 = vmax.f32 %v856_v1, %v936_v20  ;;  %v1023_v36 = vmin.f32 %v971_v43, %v1016_v31  ;;  %v140_v27 = vadd.f32 %v133_v8, %v2957_v34  ;;  %v201_v62 = vmul.f32 %v2955_v28, %v2989_v7 }
  0xbe   :  { %v1103_v21 = vmin.f32 %v1077_v54, %v1096_v56  ;;  %v189_v41 = vadd.f32 %v182_v2, %v2958_v50  ;;  %v220_v5 = vmul.f32 %v2956_v39, %v2989_v7  ;;  %v269_v32 = vmul.f32 %v2960_v22, %v2989_v7  ;;  %v1155_v56 = vld [vmem:[%s2720_s1 + $0x18] sm:$0xff] }
  0xbf   :  { %v1030_v44 = vmax.f32 %v943_v61, %v1023_v36  ;;  %v147_v51 = vmin.f32 %v121_v57, %v140_v27  ;;  %v208_v37 = vadd.f32 %v201_v62, %v2959_v45  ;;  %v288_v20 = vmul.f32 %v1560_v53, %v2989_v7 }
  0xc0   :  { %v1110_v43 = vmin.f32 %v1058_v18, %v1103_v21  ;;  %v227_v1 = vadd.f32 %v220_v5, %v2961_v17  ;;  %v276_v54 = vadd.f32 %v269_v32, %v1553_v40  ;;  %v307_v2 = vmul.f32 %v1579_v6, %v2989_v7 }
  0xc1   :  { %v154_v31 = vmin.f32 %v102_v48, %v147_v51  ;;  %v295_v10 = vadd.f32 %v288_v20, %v1572_v0  ;;  %v356_v61 = vmul.f32 %v1601_v24, %v2989_v7  ;;  %v375_v57 = vmul.f32 %v1621_v49, %v2989_v7 }
  0xc2   :  { %v1117_v27 = vmax.f32 %v1030_v44, %v1110_v43  ;;  %v234_v36 = vmin.f32 %v208_v37, %v227_v1  ;;  %v314_v18 = vadd.f32 %v307_v2, %v1592_v16  ;;  %v394_v8 = vmul.f32 %v1638_v4, %v2989_v7 }
  0xc3   :  { %v161_v48 = vmax.f32 %v154_v31, -3e+38  ;;  %v363_v62 = vadd.f32 %v356_v61, %v1613_v33  ;;  %v382_v21 = vadd.f32 %v375_v57, %v1629_v60  ;;  %v443_v5 = vmul.f32 %v1660_v25, %v2989_v7 }
  0xc4   :  { %vm1124_vm4 = vcmp.ge.f32.partialorder %v1117_v27, 0.0  ;;  %v241_v32 = vmin.f32 %v189_v41, %v234_v36  ;;  %v321_v44 = vmin.f32 %v295_v10, %v314_v18  ;;  %v401_v51 = vadd.f32 %v394_v8, %v1649_v19 }
  0xc5   :  { %v1347_v37 = vsel %vm1124_vm4, 1.0, %v2919_v42  ;;  %v450_v20 = vadd.f32 %v443_v5, %v1673_v35  ;;  %v462_v43 = vmul.f32 %v1680_v58, %v2989_v7  ;;  %v481_v1 = vmul.f32 %v1698_v23, %v2989_v7 }
  0xc6   :  { %1145 = vst [vmem:[%s2721_s2 + $0x18] sm:$0xff] %v1347_v37  ;;  %v1162_v2 = vsub.f32 %v1347_v37, %v1155_v56  ;;  %v248_v31 = vmax.f32 %v161_v48, %v241_v32  ;;  %v328_v41 = vmin.f32 %v276_v54, %v321_v44  ;;  %v408_v10 = vmin.f32 %v382_v21, %v401_v51  ;;  %v2997_v32 = vld [vmem:[#allocation35_spill] sm:$0xff] }
  0xc7   :  { %v469_v61 = vadd.f32 %v462_v43, %v1689_v12  ;;  %v488_v57 = vadd.f32 %v481_v1, %v1711_v30  ;;  %v530_v27 = vmul.f32 %v1721_v38, %v2989_v7  ;;  %v549_v36 = vmul.f32 %v1741_v29, %v2989_v7  ;;  %v2998_v43 = vld [vmem:[#allocation34_spill] sm:$0xff]  ;;  %v2999_v30 = vld [vmem:[#allocation37_spill] sm:$0xff] }
  0xc8   :  { %v1169_v18 = vmul.f32 %v2922_v47, %v1162_v2  ;;  %v335_v8 = vmax.f32 %v248_v31, %v328_v41  ;;  %v415_v5 = vmin.f32 %v363_v62, %v408_v10  ;;  %v568_v56 = vmul.f32 %v1756_v9, %v2989_v7  ;;  %v3000_v62 = vld [vmem:[#allocation36_spill] sm:$0xff]  ;;  %v3001_v10 = vld [vmem:[#allocation39_spill] sm:$0xff] }
  0xc9   :  { %v495_v48 = vmin.f32 %v469_v61, %v488_v57  ;;  %v537_v54 = vadd.f32 %v530_v27, %v1733_v11  ;;  %v556_v21 = vadd.f32 %v549_v36, %v1749_v52  ;;  %v617_v44 = vmul.f32 %v2997_v32, %v2989_v7  ;;  %v3002_v57 = vld [vmem:[#allocation41_spill] sm:$0xff]  ;;  %v3003_v52 = vld [vmem:[#allocation38_spill] sm:$0xff]  ;;  %v3012_v9 = vld [vmem:[#allocation48_spill] sm:$0xff] }
  0xca   :  { %v1176_v51 = vmul.f32 %v1169_v18, %v1169_v18  ;;  %v422_v37 = vmax.f32 %v335_v8, %v415_v5  ;;  %v575_v1 = vadd.f32 %v568_v56, %v2998_v43  ;;  %v636_v2 = vmul.f32 %v2999_v30, %v2989_v7  ;;  %v3004_v18 = vld [vmem:[#allocation43_spill] sm:$0xff]  ;;  %v3005_v5 = vld [vmem:[#allocation45_spill] sm:$0xff] }
  0xcb   :  { %v502_v31 = vmin.f32 %v450_v20, %v495_v48  ;;  %v624_v41 = vadd.f32 %v617_v44, %v3000_v62  ;;  %v655_v61 = vmul.f32 %v3001_v10, %v2989_v7  ;;  %v704_v27 = vmul.f32 %v3002_v57, %v2989_v7  ;;  %v3006_v20 = vld [vmem:[#allocation40_spill] sm:$0xff]  ;;  %v3007_v44 = vld [vmem:[#allocation42_spill] sm:$0xff]  ;;  %v3008_v10 = vld [vmem:[#allocation47_spill] sm:$0xff] }
  0xcc   :  { %1186 = vadd.xlane.f32.xlu1 %v1176_v51  ;;  %v582_v36 = vmin.f32 %v556_v21, %v575_v1  ;;  %v643_v32 = vadd.f32 %v636_v2, %v3003_v52  ;;  %v723_v8 = vmul.f32 %v3004_v18, %v2989_v7  ;;  %v742_v56 = vmul.f32 %v3005_v5, %v2989_v7  ;;  %v3009_v57 = vld [vmem:[#allocation44_spill] sm:$0xff]  ;;  %v3010_v21 = vld [vmem:[#allocation46_spill] sm:$0xff]  ;;  %v3011_v2 = vld [vmem:[#allocation49_spill] sm:$0xff] }
  0xcd   :  { %v509_v30 = vmax.f32 %v422_v37, %v502_v31  ;;  %v662_v48 = vadd.f32 %v655_v61, %v3006_v20  ;;  %v711_v62 = vadd.f32 %v704_v27, %v3007_v44  ;;  %v791_v43 = vmul.f32 %v3008_v10, %v2989_v7  ;;  %v3013_v37 = vld [vmem:[#allocation51_spill] sm:$0xff]  ;;  %v3014_v61 = vld [vmem:[#allocation53_spill] sm:$0xff] }
  0xce   :  { %v589_v11 = vmin.f32 %v537_v54, %v582_v36  ;;  %v730_v51 = vadd.f32 %v723_v8, %v3009_v57  ;;  %v749_v1 = vadd.f32 %v742_v56, %v3010_v21  ;;  %v810_v52 = vmul.f32 %v3011_v2, %v2989_v7  ;;  %v3015_v21 = vld [vmem:[#allocation54_spill] sm:$0xff] }
  0xcf   :  { %v669_v18 = vmin.f32 %v643_v32, %v662_v48  ;;  %v798_v47 = vadd.f32 %v791_v43, %v3012_v9  ;;  %v829_v31 = vmul.f32 %v3013_v37, %v2989_v7  ;;  %v878_v27 = vmul.f32 %v3014_v61, %v2989_v7  ;;  %v3016_v43 = vld [vmem:[#allocation57_spill] sm:$0xff]  ;;  %v3017_v37 = vld [vmem:[#allocation56_spill] sm:$0xff]  ;;  %v3018_v61 = vld [vmem:[#allocation59_spill] sm:$0xff] }
  0xd0   :  { %v596_v5 = vmax.f32 %v509_v30, %v589_v11  ;;  %v756_v44 = vmin.f32 %v730_v51, %v749_v1  ;;  %v817_v54 = vadd.f32 %v810_v52, %v2976_v3  ;;  %v897_v36 = vmul.f32 %v2975_v46, %v2989_v7  ;;  %v3019_v11 = vld [vmem:[#allocation61_spill] sm:$0xff]  ;;  %v3020_v46 = vld [vmem:[#allocation58_spill] sm:$0xff] }
  0xd1   :  { %v676_v8 = vmin.f32 %v624_v41, %v669_v18  ;;  %v836_v56 = vadd.f32 %v829_v31, %v2977_v59  ;;  %v885_v32 = vadd.f32 %v878_v27, %v3015_v21  ;;  %v916_v48 = vmul.f32 %v3016_v43, %v2989_v7  ;;  %v3021_v18 = vld [vmem:[#allocation63_spill] sm:$0xff]  ;;  %v3022_v27 = vld [vmem:[#allocation60_spill] sm:$0xff]  ;;  %v3023_v59 = vld [vmem:[#allocation62_spill] sm:$0xff] }
  0xd2   :  { %v763_v9 = vmin.f32 %v711_v62, %v756_v44  ;;  %v904_v2 = vadd.f32 %v897_v36, %v3017_v37  ;;  %v965_v30 = vmul.f32 %v3018_v61, %v2989_v7  ;;  %v984_v52 = vmul.f32 %v3019_v11, %v2989_v7  ;;  %v3024_v62 = vld [vmem:[#allocation65_spill] sm:$0xff]  ;;  %v3025_v36 = vld [vmem:[#allocation67_spill] sm:$0xff] }
  0xd3   :  { %v683_v51 = vmax.f32 %v596_v5, %v676_v8  ;;  %v843_v1 = vmin.f32 %v817_v54, %v836_v56  ;;  %v923_v41 = vadd.f32 %v916_v48, %v3020_v46  ;;  %v1003_v31 = vmul.f32 %v3021_v18, %v2989_v7  ;;  %v3026_v5 = vld [vmem:[#allocation64_spill] sm:$0xff]  ;;  %v3027_v8 = vld [vmem:[#allocation66_spill] sm:$0xff]  ;;  %v3029_v18 = vld [vmem:[#allocation69_spill] sm:$0xff] }
  0xd4   :  { %v972_v21 = vadd.f32 %v965_v30, %v3022_v27  ;;  %v991_v43 = vadd.f32 %v984_v52, %v3023_v59  ;;  %v1052_v44 = vmul.f32 %v3024_v62, %v2989_v7  ;;  %v1071_v61 = vmul.f32 %v3025_v36, %v2989_v7  ;;  %v3028_v48 = vld [vmem:[#allocation68_spill] sm:$0xff]  ;;  %v3030_v27 = vld [vmem:[#allocation11_spill] sm:$0xff] }
  0xd5   :  { %v770_v37 = vmax.f32 %v683_v51, %v763_v9  ;;  %v850_v3 = vmin.f32 %v798_v47, %v843_v1  ;;  %v930_v11 = vmin.f32 %v904_v2, %v923_v41  ;;  %v1010_v54 = vadd.f32 %v1003_v31, %v3026_v5  ;;  %v3031_v52 = vld [vmem:[#allocation12_spill] sm:$0xff] }
  0xd6   :  { %v1059_v56 = vadd.f32 %v1052_v44, %v3027_v8  ;;  %v1078_v46 = vadd.f32 %v1071_v61, %v3028_v48  ;;  %v1090_v30 = vmul.f32 %v3029_v18, %v2989_v7  ;;  %v96_v59 = vmul.f32 %v3031_v52, %v3030_v27 }
  0xd7   :  { %v857_v57 = vmax.f32 %v770_v37, %v850_v3  ;;  %v937_v62 = vmin.f32 %v885_v32, %v930_v11  ;;  %v1017_v10 = vmin.f32 %v991_v43, %v1010_v54  ;;  %v115_v9 = vmul.f32 %v2991_v55, %v3030_v27 }
  0xd8   :  { %v1097_v47 = vadd.f32 %v1090_v30, %v2993_v26  ;;  %v103_v2 = vadd.f32 %v96_v59, %v2994_v14  ;;  %v134_v51 = vmul.f32 %v2992_v63, %v3030_v27  ;;  %v183_v61 = vmul.f32 %v2996_v15, %v3030_v27 }
  0xd9   :  { %v944_v7 = vmax.f32 %v857_v57, %v937_v62  ;;  %v1024_v1 = vmin.f32 %v972_v21, %v1017_v10  ;;  %v122_v41 = vadd.f32 %v115_v9, %v2995_v13  ;;  %v202_v3 = vmul.f32 %v2955_v28, %v3030_v27 }
  0xda   :  { %v1104_v37 = vmin.f32 %v1078_v46, %v1097_v47  ;;  %v141_v32 = vadd.f32 %v134_v51, %v2957_v34  ;;  %v190_v43 = vadd.f32 %v183_v61, %v2958_v50  ;;  %v221_v59 = vmul.f32 %v2956_v39, %v3030_v27 }
  0xdb   :  { %v1031_v11 = vmax.f32 %v944_v7, %v1024_v1  ;;  %v209_v31 = vadd.f32 %v202_v3, %v2959_v45  ;;  %v270_v57 = vmul.f32 %v2960_v22, %v3030_v27  ;;  %v289_v10 = vmul.f32 %v1560_v53, %v3030_v27  ;;  %v1156_v1 = vld [vmem:[%s2720_s1 + $0x20] sm:$0xff] }
  0xdc   :  { %v1111_v21 = vmin.f32 %v1059_v56, %v1104_v37  ;;  %v148_v62 = vmin.f32 %v122_v41, %v141_v32  ;;  %v228_v46 = vadd.f32 %v221_v59, %v2961_v17  ;;  %v308_v44 = vmul.f32 %v1579_v6, %v3030_v27 }
  0xdd   :  { %v277_v54 = vadd.f32 %v270_v57, %v1553_v40  ;;  %v296_v30 = vadd.f32 %v289_v10, %v1572_v0  ;;  %v357_v9 = vmul.f32 %v1601_v24, %v3030_v27  ;;  %v376_v47 = vmul.f32 %v1621_v49, %v3030_v27 }
  0xde   :  { %v1118_v51 = vmax.f32 %v1031_v11, %v1111_v21  ;;  %v155_v61 = vmin.f32 %v103_v2, %v148_v62  ;;  %v235_v7 = vmin.f32 %v209_v31, %v228_v46  ;;  %v315_v56 = vadd.f32 %v308_v44, %v1592_v16 }
  0xdf   :  { %v364_v41 = vadd.f32 %v357_v9, %v1613_v33  ;;  %v383_v3 = vadd.f32 %v376_v47, %v1629_v60  ;;  %v395_v37 = vmul.f32 %v1638_v4, %v3030_v27  ;;  %v444_v32 = vmul.f32 %v1660_v25, %v3030_v27 }
  0xe0   :  { %vm1125_vm5 = vcmp.ge.f32.partialorder %v1118_v51, 0.0  ;;  %v162_v59 = vmax.f32 %v155_v61, -3e+38  ;;  %v242_v2 = vmin.f32 %v190_v43, %v235_v7  ;;  %v322_v11 = vmin.f32 %v296_v30, %v315_v56  ;;  %v3032_v61 = vld [vmem:[#allocation23_spill] sm:$0xff] }
  0xe1   :  { %v1348_v31 = vsel %vm1125_vm5, 1.0, %v2919_v42  ;;  %v402_v57 = vadd.f32 %v395_v37, %v1649_v19  ;;  %v451_v10 = vadd.f32 %v444_v32, %v1673_v35  ;;  %v463_v21 = vmul.f32 %v1680_v58, %v3030_v27  ;;  %v3033_v37 = vld [vmem:[#allocation28_spill] sm:$0xff] }
  0xe2   :  { %1146 = vst [vmem:[%s2721_s2 + $0x20] sm:$0xff] %v1348_v31  ;;  %v1163_v62 = vsub.f32 %v1348_v31, %v1156_v1  ;;  %v249_v46 = vmax.f32 %v162_v59, %v242_v2  ;;  %v329_v44 = vmin.f32 %v277_v54, %v322_v11  ;;  %v482_v43 = vmul.f32 %v1698_v23, %v3030_v27  ;;  %v3034_v1 = vld [vmem:[#allocation33_spill] sm:$0xff]  ;;  %v3035_v2 = vld [vmem:[#allocation30_spill] sm:$0xff] }
  0xe3   :  { %v409_v30 = vmin.f32 %v383_v3, %v402_v57  ;;  %v470_v9 = vadd.f32 %v463_v21, %v1689_v12  ;;  %v531_v47 = vmul.f32 %v1721_v38, %v3030_v27  ;;  %v550_v51 = vmul.f32 %v1741_v29, %v3030_v27  ;;  %v3036_v3 = vld [vmem:[#allocation32_spill] sm:$0xff]  ;;  %v3037_v57 = vld [vmem:[#allocation35_spill] sm:$0xff]  ;;  %v3038_v23 = vld [vmem:[#allocation34_spill] sm:$0xff] }
  0xe4   :  { %v1170_v7 = vmul.f32 %v3032_v61, %v1163_v62  ;;  %v336_v56 = vmax.f32 %v249_v46, %v329_v44  ;;  %v489_v32 = vadd.f32 %v482_v43, %v3033_v37  ;;  %v569_v54 = vmul.f32 %v3034_v1, %v3030_v27  ;;  %v3039_v62 = vld [vmem:[#allocation37_spill] sm:$0xff]  ;;  %v3040_v43 = vld [vmem:[#allocation36_spill] sm:$0xff]  ;;  %v3041_v1 = vld [vmem:[#allocation39_spill] sm:$0xff] }
  0xe5   :  { %v416_v59 = vmin.f32 %v364_v41, %v409_v30  ;;  %v538_v11 = vadd.f32 %v531_v47, %v3035_v2  ;;  %v557_v31 = vadd.f32 %v550_v51, %v3036_v3  ;;  %v618_v21 = vmul.f32 %v3037_v57, %v3030_v27  ;;  %v3042_v30 = vld [vmem:[#allocation41_spill] sm:$0xff]  ;;  %v3043_v57 = vld [vmem:[#allocation38_spill] sm:$0xff] }
  0xe6   :  { %v1177_v12 = vmul.f32 %v1170_v7, %v1170_v7  ;;  %v496_v38 = vmin.f32 %v470_v9, %v489_v32  ;;  %v576_v29 = vadd.f32 %v569_v54, %v3038_v23  ;;  %v637_v46 = vmul.f32 %v3039_v62, %v3030_v27  ;;  %v3044_v9 = vld [vmem:[#allocation43_spill] sm:$0xff]  ;;  %v3045_v62 = vld [vmem:[#allocation42_spill] sm:$0xff] }
  0xe7   :  { %v423_v44 = vmax.f32 %v336_v56, %v416_v59  ;;  %v625_v37 = vadd.f32 %v618_v21, %v3040_v43  ;;  %v656_v41 = vmul.f32 %v3041_v1, %v3030_v27  ;;  %v705_v47 = vmul.f32 %v3042_v30, %v3030_v27  ;;  %v3046_v59 = vld [vmem:[#allocation45_spill] sm:$0xff]  ;;  %v3047_v43 = vld [vmem:[#allocation47_spill] sm:$0xff] }
  0xe8   :  { %1188 = vadd.xlane.f32.xlu0 %v1177_v12  ;;  %v503_v51 = vmin.f32 %v451_v10, %v496_v38  ;;  %v583_v3 = vmin.f32 %v557_v31, %v576_v29  ;;  %v644_v7 = vadd.f32 %v637_v46, %v3043_v57  ;;  %v724_v32 = vmul.f32 %v3044_v9, %v3030_v27  ;;  %v3048_v12 = vld [vmem:[#allocation44_spill] sm:$0xff]  ;;  %v3049_v29 = vld [vmem:[#allocation49_spill] sm:$0xff]  ;;  %v3050_v46 = vld [vmem:[#allocation46_spill] sm:$0xff] }
  0xe9   :  { %v663_v54 = vadd.f32 %v656_v41, %v3006_v20  ;;  %v712_v56 = vadd.f32 %v705_v47, %v3045_v62  ;;  %v743_v21 = vmul.f32 %v3046_v59, %v3030_v27  ;;  %v792_v1 = vmul.f32 %v3047_v43, %v3030_v27  ;;  %v3051_v9 = vld [vmem:[#allocation48_spill] sm:$0xff]  ;;  %v3052_v47 = vld [vmem:[#allocation51_spill] sm:$0xff]  ;;  %v3053_v59 = vld [vmem:[#allocation50_spill] sm:$0xff] }
  0xea   :  { %v510_v23 = vmax.f32 %v423_v44, %v503_v51  ;;  %v590_v30 = vmin.f32 %v538_v11, %v583_v3  ;;  %v731_v38 = vadd.f32 %v724_v32, %v3048_v12  ;;  %v811_v10 = vmul.f32 %v3049_v29, %v3030_v27  ;;  %v3054_v43 = vld [vmem:[#allocation53_spill] sm:$0xff]  ;;  %v3055_v11 = vld [vmem:[#allocation55_spill] sm:$0xff]  ;;  %v3056_v29 = vld [vmem:[#allocation52_spill] sm:$0xff] }
  0xeb   :  { %v670_v31 = vmin.f32 %v644_v7, %v663_v54  ;;  %v750_v57 = vadd.f32 %v743_v21, %v3050_v46  ;;  %v799_v41 = vadd.f32 %v792_v1, %v3051_v9  ;;  %v830_v62 = vmul.f32 %v3052_v47, %v3030_v27  ;;  %v3057_v54 = vld [vmem:[#allocation57_spill] sm:$0xff]  ;;  %v3058_v1 = vld [vmem:[#allocation54_spill] sm:$0xff]  ;;  %v3059_v46 = vld [vmem:[#allocation56_spill] sm:$0xff] }
  0xec   :  { %v597_v20 = vmax.f32 %v510_v23, %v590_v30  ;;  %v818_v2 = vadd.f32 %v811_v10, %v3053_v59  ;;  %v879_v44 = vmul.f32 %v3054_v43, %v3030_v27  ;;  %v898_v3 = vmul.f32 %v3055_v11, %v3030_v27  ;;  %v3060_v23 = vld [vmem:[#allocation59_spill] sm:$0xff]  ;;  %v3061_v10 = vld [vmem:[#allocation61_spill] sm:$0xff] }
  0xed   :  { %v677_v51 = vmin.f32 %v625_v37, %v670_v31  ;;  %v757_v32 = vmin.f32 %v731_v38, %v750_v57  ;;  %v837_v7 = vadd.f32 %v830_v62, %v3056_v29  ;;  %v917_v21 = vmul.f32 %v3057_v54, %v3030_v27  ;;  %v3062_v37 = vld [vmem:[#allocation58_spill] sm:$0xff]  ;;  %v3063_v38 = vld [vmem:[#allocation60_spill] sm:$0xff]  ;;  %v3065_v54 = vld [vmem:[#allocation63_spill] sm:$0xff] }
  0xee   :  { %v886_v9 = vadd.f32 %v879_v44, %v3058_v1  ;;  %v905_v47 = vadd.f32 %v898_v3, %v3059_v46  ;;  %v966_v30 = vmul.f32 %v3060_v23, %v3030_v27  ;;  %v985_v59 = vmul.f32 %v3061_v10, %v3030_v27  ;;  %v3064_v31 = vld [vmem:[#allocation62_spill] sm:$0xff]  ;;  %v3066_v3 = vld [vmem:[#allocation65_spill] sm:$0xff] }
  0xef   :  { %v684_v43 = vmax.f32 %v597_v20, %v677_v51  ;;  %v764_v12 = vmin.f32 %v712_v56, %v757_v32  ;;  %v844_v11 = vmin.f32 %v818_v2, %v837_v7  ;;  %v924_v57 = vadd.f32 %v917_v21, %v3062_v37 }
  0xf0   :  { %v973_v62 = vadd.f32 %v966_v30, %v3063_v38  ;;  %v992_v29 = vadd.f32 %v985_v59, %v3064_v31  ;;  %v1004_v44 = vmul.f32 %v3065_v54, %v3030_v27  ;;  %v1053_v1 = vmul.f32 %v3066_v3, %v3030_v27  ;;  %v3067_v59 = vld [vmem:[#allocation8_spill] sm:$0xff] }
  0xf1   :  { %v771_v46 = vmax.f32 %v684_v43, %v764_v12  ;;  %v851_v23 = vmin.f32 %v799_v41, %v844_v11  ;;  %v931_v61 = vmin.f32 %v905_v47, %v924_v57  ;;  %v1072_v20 = vmul.f32 %v3025_v36, %v3030_v27 }
  0xf2   :  { %v1011_v2 = vadd.f32 %v1004_v44, %v3026_v5  ;;  %v1060_v56 = vadd.f32 %v1053_v1, %v3027_v8  ;;  %v1091_v51 = vmul.f32 %v3029_v18, %v3030_v27  ;;  %v97_v32 = vmul.f32 %v3031_v52, %v3067_v59 }
  0xf3   :  { %v858_v7 = vmax.f32 %v771_v46, %v851_v23  ;;  %v938_v21 = vmin.f32 %v886_v9, %v931_v61  ;;  %v1079_v30 = vadd.f32 %v1072_v20, %v3028_v48  ;;  %v116_v43 = vmul.f32 %v2991_v55, %v3067_v59 }
  0xf4   :  { %v1018_v12 = vmin.f32 %v992_v29, %v1011_v2  ;;  %v1098_v41 = vadd.f32 %v1091_v51, %v2993_v26  ;;  %v104_v47 = vadd.f32 %v97_v32, %v2994_v14  ;;  %v135_v11 = vmul.f32 %v2992_v63, %v3067_v59 }
  0xf5   :  { %v945_v1 = vmax.f32 %v858_v7, %v938_v21  ;;  %v123_v27 = vadd.f32 %v116_v43, %v2995_v13  ;;  %v184_v52 = vmul.f32 %v2996_v15, %v3067_v59  ;;  %v203_v61 = vmul.f32 %v2955_v28, %v3067_v59  ;;  %v3068_v21 = vld [vmem:[#allocation27_spill] sm:$0xff] }
  0xf6   :  { %v1025_v9 = vmin.f32 %v973_v62, %v1018_v12  ;;  %v1105_v46 = vmin.f32 %v1079_v30, %v1098_v41  ;;  %v142_v55 = vadd.f32 %v135_v11, %v2957_v34  ;;  %v222_v29 = vmul.f32 %v2956_v39, %v3067_v59  ;;  %v3069_v12 = vld [vmem:[#allocation29_spill] sm:$0xff] }
  0xf7   :  { %v191_v14 = vadd.f32 %v184_v52, %v2958_v50  ;;  %v210_v63 = vadd.f32 %v203_v61, %v2959_v45  ;;  %v271_v13 = vmul.f32 %v2960_v22, %v3067_v59  ;;  %v290_v15 = vmul.f32 %v1560_v53, %v3067_v59  ;;  %v3073_v52 = vld [vmem:[#allocation28_spill] sm:$0xff] }
  0xf8   :  { %v1032_v23 = vmax.f32 %v945_v1, %v1025_v9  ;;  %v1112_v57 = vmin.f32 %v1060_v56, %v1105_v46  ;;  %v149_v28 = vmin.f32 %v123_v27, %v142_v55  ;;  %v229_v62 = vadd.f32 %v222_v29, %v2961_v17  ;;  %v1157_v17 = vld [vmem:[%s2720_s1 + $0x28] sm:$0xff]  ;;  %v3072_v1 = vld [vmem:[#allocation26_spill] sm:$0xff] }
  0xf9   :  { %v278_v34 = vadd.f32 %v271_v13, %v1553_v40  ;;  %v297_v44 = vadd.f32 %v290_v15, %v1572_v0  ;;  %v309_v39 = vmul.f32 %v1579_v6, %v3067_v59  ;;  %v358_v50 = vmul.f32 %v1601_v24, %v3067_v59  ;;  %v3074_v9 = vld [vmem:[#allocation33_spill] sm:$0xff]  ;;  %v3075_v29 = vld [vmem:[#allocation30_spill] sm:$0xff] }
  0xfa   :  { %v1119_v45 = vmax.f32 %v1032_v23, %v1112_v57  ;;  %v156_v22 = vmin.f32 %v104_v47, %v149_v28  ;;  %v236_v20 = vmin.f32 %v210_v63, %v229_v62  ;;  %v377_v53 = vmul.f32 %v1621_v49, %v3067_v59  ;;  %v3071_v47 = vld [vmem:[#allocation23_spill] sm:$0xff]  ;;  %v3076_v63 = vld [vmem:[#allocation32_spill] sm:$0xff]  ;;  %v3077_v57 = vld [vmem:[#allocation34_spill] sm:$0xff] }
  0xfb   :  { %v316_v40 = vadd.f32 %v309_v39, %v1592_v16  ;;  %v365_v0 = vadd.f32 %v358_v50, %v1613_v33  ;;  %v396_v6 = vmul.f32 %v1638_v4, %v3067_v59  ;;  %v445_v24 = vmul.f32 %v1660_v25, %v3067_v59  ;;  %v3078_v62 = vld [vmem:[#allocation35_spill] sm:$0xff]  ;;  %v3079_v39 = vld [vmem:[#allocation37_spill] sm:$0xff] }
  0xfc   :  { %vm1126_vm6 = vcmp.ge.f32.partialorder %v1119_v45, 0.0  ;;  %v163_v2 = vmax.f32 %v156_v22, -3e+38  ;;  %v243_v56 = vmin.f32 %v191_v14, %v236_v20  ;;  %v384_v51 = vadd.f32 %v377_v53, %v1629_v60  ;;  %v3080_v45 = vld [vmem:[#allocation39_spill] sm:$0xff]  ;;  %v3081_v20 = vld [vmem:[#allocation41_spill] sm:$0xff] }
  0xfd   :  { %v1349_v49 = vsel %vm1126_vm6, 1.0, %v2919_v42  ;;  %v323_v32 = vmin.f32 %v297_v44, %v316_v40  ;;  %v403_v7 = vadd.f32 %v396_v6, %v1649_v19  ;;  %v452_v16 = vadd.f32 %v445_v24, %v1673_v35  ;;  %v3070_v19 = vld [vmem:[#allocation31_spill] sm:$0xff] }
  0xfe   :  { %1147 = vst [vmem:[%s2721_s2 + $0x28] sm:$0xff] %v1349_v49  ;;  %v1164_v33 = vsub.f32 %v1349_v49, %v1157_v17  ;;  %v250_v4 = vmax.f32 %v163_v2, %v243_v56  ;;  %v464_v25 = vmul.f32 %v1680_v58, %v3067_v59  ;;  %v483_v30 = vmul.f32 %v3068_v21, %v3067_v59  ;;  %v3083_v24 = vld [vmem:[#allocation43_spill] sm:$0xff]  ;;  %v3084_v56 = vld [vmem:[#allocation38_spill] sm:$0xff]  ;;  %v3085_v49 = vld [vmem:[#allocation40_spill] sm:$0xff] }
  0xff   :  { %v330_v60 = vmin.f32 %v278_v34, %v323_v32  ;;  %v410_v43 = vmin.f32 %v384_v51, %v403_v7  ;;  %v532_v41 = vmul.f32 %v3069_v12, %v3067_v59  ;;  %v551_v35 = vmul.f32 %v3070_v19, %v3067_v59  ;;  %v3086_v7 = vld [vmem:[#allocation42_spill] sm:$0xff] }
 0x100   :  { %v1171_v11 = vmul.f32 %v3071_v47, %v1164_v33  ;;  %v471_v27 = vadd.f32 %v464_v25, %v3072_v1  ;;  %v490_v61 = vadd.f32 %v483_v30, %v3073_v52  ;;  %v570_v58 = vmul.f32 %v3074_v9, %v3067_v59  ;;  %v3090_v19 = vld [vmem:[#allocation46_spill] sm:$0xff]  ;;  %v3093_v9 = vld [vmem:[#allocation48_spill] sm:$0xff] }
 0x101   :  { %v337_v46 = vmax.f32 %v250_v4, %v330_v60  ;;  %v417_v55 = vmin.f32 %v365_v0, %v410_v43  ;;  %v539_v14 = vadd.f32 %v532_v41, %v3075_v29  ;;  %v558_v13 = vadd.f32 %v551_v35, %v3076_v63  ;;  %v3082_v0 = vld [vmem:[#allocation36_spill] sm:$0xff]  ;;  %v3087_v4 = vld [vmem:[#allocation45_spill] sm:$0xff]  ;;  %v3095_v29 = vld [vmem:[#allocation55_spill] sm:$0xff] }
 0x102   :  { %v1178_v15 = vmul.f32 %v1171_v11, %v1171_v11  ;;  %v497_v23 = vmin.f32 %v471_v27, %v490_v61  ;;  %v577_v28 = vadd.f32 %v570_v58, %v3077_v57  ;;  %v619_v34 = vmul.f32 %v3078_v62, %v3067_v59  ;;  %v3088_v60 = vld [vmem:[#allocation44_spill] sm:$0xff]  ;;  %v3091_v11 = vld [vmem:[#allocation49_spill] sm:$0xff]  ;;  %v3092_v27 = vld [vmem:[#allocation51_spill] sm:$0xff] }
 0x103   :  { %v424_v44 = vmax.f32 %v337_v46, %v417_v55  ;;  %v638_v50 = vmul.f32 %v3079_v39, %v3067_v59  ;;  %v657_v22 = vmul.f32 %v3080_v45, %v3067_v59  ;;  %v706_v53 = vmul.f32 %v3081_v20, %v3067_v59  ;;  %v3094_v46 = vld [vmem:[#allocation53_spill] sm:$0xff]  ;;  %v3097_v57 = vld [vmem:[#allocation52_spill] sm:$0xff] }
 0x104   :  { %1190 = vadd.xlane.f32.xlu1 %v1178_v15  ;;  %v504_v17 = vmin.f32 %v452_v16, %v497_v23  ;;  %v584_v40 = vmin.f32 %v558_v13, %v577_v28  ;;  %v626_v6 = vadd.f32 %v619_v34, %v3082_v0  ;;  %v725_v2 = vmul.f32 %v3083_v24, %v3067_v59  ;;  %v3089_v16 = vld [vmem:[#allocation47_spill] sm:$0xff]  ;;  %v3096_v15 = vld [vmem:[#allocation50_spill] sm:$0xff]  ;;  %v3098_v62 = vld [vmem:[#allocation56_spill] sm:$0xff] }
 0x105   :  { %v645_v51 = vadd.f32 %v638_v50, %v3084_v56  ;;  %v664_v32 = vadd.f32 %v657_v22, %v3085_v49  ;;  %v713_v33 = vadd.f32 %v706_v53, %v3086_v7  ;;  %v744_v25 = vmul.f32 %v3087_v4, %v3067_v59  ;;  %v3100_v50 = vld [vmem:[#allocation59_spill] sm:$0xff] }
 0x106   :  { %v511_v21 = vmax.f32 %v424_v44, %v504_v17  ;;  %v591_v30 = vmin.f32 %v539_v14, %v584_v40  ;;  %v732_v43 = vadd.f32 %v725_v2, %v3088_v60  ;;  %v793_v12 = vmul.f32 %v3089_v16, %v3067_v59  ;;  %v3099_v44 = vld [vmem:[#allocation57_spill] sm:$0xff]  ;;  %v3101_v40 = vld [vmem:[#allocation54_spill] sm:$0xff] }
 0x107   :  { %v671_v41 = vmin.f32 %v645_v51, %v664_v32  ;;  %v751_v35 = vadd.f32 %v744_v25, %v3090_v19  ;;  %v812_v1 = vmul.f32 %v3091_v11, %v3067_v59  ;;  %v831_v52 = vmul.f32 %v3092_v27, %v3067_v59 }
 0x108   :  { %v598_v61 = vmax.f32 %v511_v21, %v591_v30  ;;  %v800_v58 = vadd.f32 %v793_v12, %v3093_v9  ;;  %v880_v55 = vmul.f32 %v3094_v46, %v3067_v59  ;;  %v899_v14 = vmul.f32 %v3095_v29, %v3067_v59 }
 0x109   :  { %v678_v63 = vmin.f32 %v626_v6, %v671_v41  ;;  %v758_v13 = vmin.f32 %v732_v43, %v751_v35  ;;  %v819_v23 = vadd.f32 %v812_v1, %v3096_v15  ;;  %v838_v28 = vadd.f32 %v831_v52, %v3097_v57 }
 0x10a   :  { %v906_v34 = vadd.f32 %v899_v14, %v3098_v62  ;;  %v918_v39 = vmul.f32 %v3099_v44, %v3067_v59  ;;  %v967_v45 = vmul.f32 %v3100_v50, %v3067_v59  ;;  %v986_v17 = vmul.f32 %v3061_v10, %v3067_v59 }
 0x10b   :  { %v685_v22 = vmax.f32 %v598_v61, %v678_v63  ;;  %v765_v20 = vmin.f32 %v713_v33, %v758_v13  ;;  %v845_v53 = vmin.f32 %v819_v23, %v838_v28  ;;  %v887_v0 = vadd.f32 %v880_v55, %v3101_v40 }
 0x10c   :  { %v925_v6 = vadd.f32 %v918_v39, %v3062_v37  ;;  %v1005_v24 = vmul.f32 %v3065_v54, %v3067_v59  ;;  %v1054_v2 = vmul.f32 %v3066_v3, %v3067_v59  ;;  %v993_v49 = vadd.f32 %v986_v17, %v3064_v31 }
 0x10d   :  { %v772_v56 = vmax.f32 %v685_v22, %v765_v20  ;;  %v852_v51 = vmin.f32 %v800_v58, %v845_v53  ;;  %v1073_v32 = vmul.f32 %v3025_v36, %v3067_v59  ;;  %v974_v10 = vadd.f32 %v967_v45, %v3063_v38 }
 0x10e   :  { %v932_v7 = vmin.f32 %v906_v34, %v925_v6  ;;  %v1012_v33 = vadd.f32 %v1005_v24, %v3026_v5  ;;  %v1092_v37 = vmul.f32 %v3029_v18, %v3067_v59  ;;  %v1061_v21 = vadd.f32 %v1054_v2, %v3027_v8  ;;  %v1158_v5 = vld [vmem:[%s2720_s1 + $0x30] sm:$0xff] }
 0x10f   :  { %v859_v4 = vmax.f32 %v772_v56, %v852_v51  ;;  %v1080_v54 = vadd.f32 %v1073_v32, %v3028_v48 }
 0x110   :  { %v939_v25 = vmin.f32 %v887_v0, %v932_v7  ;;  %v1019_v3 = vmin.f32 %v993_v49, %v1012_v33  ;;  %v1099_v31 = vadd.f32 %v1092_v37, %v2993_v26 }
 0x112   :  { %v946_v30 = vmax.f32 %v859_v4, %v939_v25  ;;  %v1026_v60 = vmin.f32 %v974_v10, %v1019_v3  ;;  %v1106_v36 = vmin.f32 %v1080_v54, %v1099_v31 }
 0x114   :  { %v1033_v43 = vmax.f32 %v946_v30, %v1026_v60  ;;  %v1113_v16 = vmin.f32 %v1061_v21, %v1106_v36 }
 0x116   :  { %v1120_v38 = vmax.f32 %v1033_v43, %v1113_v16 }
 0x118   :  { %vm1127_vm7 = vcmp.ge.f32.partialorder %v1120_v38, 0.0 }
 0x119   :  { %v1350_v18 = vsel %vm1127_vm7, 1.0, %v2919_v42 }
 0x11a   :  { %1148 = vst [vmem:[%s2721_s2 + $0x30] sm:$0xff] %v1350_v18  ;;  %v1165_v8 = vsub.f32 %v1350_v18, %v1158_v5  ;;  %s1383_s2 = smov [#allocation5]  }
 0x11c   :  { %v1172_v26 = vmul.f32 %v3071_v47, %v1165_v8 }
 0x11e   :  { %v1179_v48 = vmul.f32 %v1172_v26, %v1172_v26 }
 0x11f   :  { %v1181_v59 = vpop.xlane.xlu0 %1180  ;;  %v1185_v41 = vpop.xlane.xlu1 %1184 }
 0x120   :  { %1192 = vadd.xlane.f32.xlu0 %v1179_v48  ;;  %v1195_v35 = vsel %vm1194_vm8, %v1181_v59, 0.0  ;;  %v1198_v42 = vsel %vm1194_vm8, %v1185_v41, 0.0 }
 0x138   :  { %v1183_v12 = vpop.xlane.xlu0 %1182 }
 0x139   :  { %v1196_v19 = vsel %vm1194_vm8, %v1183_v12, 0.0 }
 0x13a   :  { %v1197_v11 = vadd.f32 %v1196_v19, %v1195_v35 }
 0x13c   :  { %v1199_v27 = vadd.f32 %v1198_v42, %v1197_v11 }
 0x155   :  { %v1187_v1 = vpop.xlane.xlu1 %1186 }
 0x156   :  { %v1200_v52 = vsel %vm1194_vm8, %v1187_v1, 0.0 }
 0x157   :  { %v1201_v9 = vadd.f32 %v1200_v52, %v1199_v27 }
 0x171   :  { %v1189_v61 = vpop.xlane.xlu0 %1188 }
 0x172   :  { %v1202_v47 = vsel %vm1194_vm8, %v1189_v61, 0.0 }
 0x173   :  { %v1203_v46 = vadd.f32 %v1202_v47, %v1201_v9 }
 0x18d   :  { %v1191_v58 = vpop.xlane.xlu1 %1190 }
 0x18e   :  { %v1204_v55 = vsel %vm1194_vm8, %v1191_v58, 0.0 }
 0x18f   :  { %v1205_v29 = vadd.f32 %v1204_v55, %v1203_v46 }
 0x1a9   :  { %v1193_v14 = vpop.xlane.xlu0 %1192 }
 0x1aa   :  { %v1206_v63 = vsel %vm1194_vm8, %v1193_v14, 0.0 }
 0x1ab   :  { %v1207_v13 = vadd.f32 %v1206_v63, %v1205_v29 }
 0x1ad   :  { %1208 = vadd.xlane.f32.xlu1 %v1207_v13 }
 0x236   :  { %v1209_v15 = vpop.xlane.xlu1 %1208 }
 0x237   :  { %v1210_v23 = vrot.slane %v1209_v15, 4 }
 0x239   :  { %v1211_v57 = vadd.f32 %v1210_v23, %v1209_v15 }
 0x23b   :  { %v1212_v28 = vrot.slane %v1211_v57, 2 }
 0x23d   :  { %v1213_v62 = vadd.f32 %v1212_v28, %v1211_v57 }
 0x23f   :  { %v1214_v34 = vrot.slane %v1213_v62, 1 }
 0x241   :  { %v1215_v44 = vadd.f32 %v1214_v34, %v1213_v62 }
 0x243   :  { %1352 = vpush %v1215_v44 }
 0x274   :  { %s1353_s1 = spop %1352 }
 0x275   :  { %1218 = sst [smem:[#allocation5]] %s1353_s1 }
 0x276   :  { %1228 = dma.smem_to_hbm %s1383_s2, 16, %s2722_s3, [#allocation3]  }
 0x277   :  { %1379 = dma.done.wait [#allocation3], 16  }
 0x278   :  { %1380 = vsyncadd [#allocation3], 4294967280 }
 0x279   :  { %1234 = sfence }
 0x27a   :  { %1235 = vsyncpa [#allocation3], 1 }
 0x27b   :  { %1236 = vsyncpa [#allocation4], 1 }

</bundles_post_ra>
